<compile_context>
chip_gen: v5e
topology: v5e:2x2
jax: 0.10.0
libtpu: 0.0.40
codegen_flags: <defaults>
</compile_context>

<pallas_src>
import functools

import jax
import jax.numpy as jnp
from jax.experimental import pallas as pl
from jax.experimental.pallas import tpu as pltpu

EPS = 1e-5


def _upa_block_kernel(x_ref, shdn_ref, shup_ref,
                      wb1_ref, g1_ref, b1_ref, red1_ref, spr1_ref,
                      wb2_ref, g2_ref, b2_ref, red2_ref, spr2_ref,
                      out_ref, *, inv_n):
    """Fused conv3x3 -> BN -> ReLU -> conv3x3 -> BN -> ReLU on one VMEM tile.

    x_ref   : (B*H, W*Cin)   lane-dense activations (batch folded into rows)
    shdn/up : (B*H, B*H)     row-shift matrices (+-1 row inside each image)
    wb*_ref : (3, W*Ci, W*Co) block-banded conv weights, one slab per kh tap
    g/b     : (1, C)          BatchNorm gamma / beta
    red/spr : (W*C, C)/(C, W*C) per-channel reduce / broadcast matrices
    out_ref : (B*H, W*Cout)
    """
    f32 = jnp.float32
    dot = functools.partial(jnp.dot, preferred_element_type=f32)

    shdn = shdn_ref[...]          # row r <- row r-1 (zero at h == 0)
    shup = shup_ref[...]          # row r <- row r+1 (zero at h == H-1)

    def conv3x3(a, wb_ref):
        a_dn = dot(shdn, a)                      # x at h-1 (0 on top edge)
        a_up = dot(shup, a)                      # x at h+1 (0 on bottom edge)
        acc = dot(a_dn, wb_ref[0])
        acc = acc + dot(a, wb_ref[1])
        acc = acc + dot(a_up, wb_ref[2])
        return acc                               # (B*H, W*Cout_cur) f32

    def bn_relu(acc, g_ref, b_ref, red_ref, spr_ref):
        # Training-mode BN over all B*H*W pixels, fully in-kernel.
        s = jnp.sum(acc, axis=0, keepdims=True)              # (1, W*C)
        mean = dot(s, red_ref[...]) * inv_n                   # (1, C)
        centered = acc - dot(mean, spr_ref[...])              # broadcast rows
        ssq = jnp.sum(centered * centered, axis=0, keepdims=True)
        var = dot(ssq, red_ref[...]) * inv_n                  # two-pass variance
        scale = g_ref[...] * jax.lax.rsqrt(var + EPS)         # (1, C)
        y = centered * dot(scale, spr_ref[...]) + dot(b_ref[...], spr_ref[...])
        return jnp.maximum(y, 0.0)

    x = x_ref[...]
    a1 = bn_relu(conv3x3(x, wb1_ref), g1_ref, b1_ref, red1_ref, spr1_ref)
    a2 = bn_relu(conv3x3(a1, wb2_ref), g2_ref, b2_ref, red2_ref, spr2_ref)
    out_ref[...] = a2.astype(out_ref.dtype)


def _banded_weights(w_oihw, W):
    """OIHW (Cout, Cin, 3, 3) -> (3, W*Cin, W*Cout) block-banded matmul weights.

    band[kh][w_in*Cin + ci, w_out*Cout + co] = w[co, ci, kh, w_in - w_out + 1]
    when |w_in - w_out| <= 1, else 0 (encodes the kw taps AND the width
    zero-padding of the 'same' 3x3 convolution).
    """
    wt = jnp.transpose(w_oihw, (2, 3, 1, 0))                      # (3,3,Cin,Cout)
    Cin, Cout = wt.shape[2], wt.shape[3]
    kw = jnp.arange(W)[:, None] - jnp.arange(W)[None, :] + 1      # (W_in, W_out)
    valid = ((kw >= 0) & (kw <= 2)).astype(w_oihw.dtype)
    band = wt[:, jnp.clip(kw, 0, 2)]                              # (3,W_in,W_out,Cin,Cout)
    band = band * valid[None, :, :, None, None]
    band = jnp.transpose(band, (0, 1, 3, 2, 4))                   # (3,W_in,Cin,W_out,Cout)
    return band.reshape(3, W * Cin, W * Cout)


def _row_shift_mats(B, H, dtype=jnp.float32):
    """(BH, BH) matrices shifting rows by +-1 within each batch element."""
    r = jnp.arange(B * H)
    h = r % H
    dn = ((r[:, None] - 1 == r[None, :]) & (h[:, None] > 0)).astype(dtype)
    up = ((r[:, None] + 1 == r[None, :]) & (h[:, None] < H - 1)).astype(dtype)
    return dn, up


def _chan_mats(W, C, dtype=jnp.float32):
    """Selection matrices for per-channel reduce / broadcast on the MXU."""
    spread = jnp.tile(jnp.eye(C, dtype=dtype), (1, W))            # (C, W*C)
    return spread.T, spread                                       # reduce, spread


@functools.partial(jax.jit, static_argnames=("cat",))
def upa_lite_block_forward(x_nchw, params, cat=False):
    """x_nchw: (B, Cin, H, W) float32. Returns (B, Cout, H, W) (NCHW)."""
    w1, g1, b1, w2, g2, b2 = params
    B, Cin, H, W = x_nchw.shape
    Cmid, Cout = w1.shape[0], w2.shape[0]

    # NCHW -> lane-dense (B*H, W*Cin).  Kept in the wrapper: the module's
    # external layout is NCHW; this is one tiny XLA pass on an ~8 KB array.
    x_flat = jnp.transpose(x_nchw, (0, 2, 3, 1)).reshape(B * H, W * Cin)

    wb1 = _banded_weights(w1, W)                  # (3, W*Cin,  W*Cmid)
    wb2 = _banded_weights(w2, W)                  # (3, W*Cmid, W*Cout)
    shdn, shup = _row_shift_mats(B, H)
    red1, spr1 = _chan_mats(W, Cmid)
    red2, spr2 = _chan_mats(W, Cout)

    kernel = functools.partial(_upa_block_kernel, inv_n=1.0 / (B * H * W))
    vmem_spec = pl.BlockSpec(memory_space=pltpu.MemorySpace.VMEM)
    out_flat = pl.pallas_call(
        kernel,
        out_shape=jax.ShapeDtypeStruct((B * H, W * Cout), jnp.float32),
        in_specs=[vmem_spec] * 13,
        out_specs=vmem_spec,
        compiler_params=pltpu.CompilerParams(
            vmem_limit_bytes=8 * 1024 * 1024),
    )(x_flat, shdn, shup,
      wb1, g1.reshape(1, Cmid), b1.reshape(1, Cmid), red1, spr1,
      wb2, g2.reshape(1, Cout), b2.reshape(1, Cout), red2, spr2)

    out = out_flat.reshape(B, H, W, Cout).transpose(0, 3, 1, 2)   # -> NCHW
    if cat:
        out = jnp.concatenate([x_nchw, out], axis=1)
    return out


def _reference_forward(x_nchw, params):
    """Pure-JAX (XLA) reference with identical semantics, for self-check."""
    w1, g1, b1, w2, g2, b2 = params

    def conv_bn_relu(x, w, g, b):
        y = jax.lax.conv_general_dilated(
            x, w, window_strides=(1, 1), padding="SAME",
            dimension_numbers=("NCHW", "OIHW", "NCHW"))
        mean = jnp.mean(y, axis=(0, 2, 3), keepdims=True)
        var = jnp.mean(jnp.square(y - mean), axis=(0, 2, 3), keepdims=True)
        y = (y - mean) * jax.lax.rsqrt(var + EPS)
        return jnp.maximum(y * g.reshape(1, -1, 1, 1) + b.reshape(1, -1, 1, 1),
                           0.0)

    return conv_bn_relu(conv_bn_relu(x_nchw, w1, g1, b1), w2, g2, b2)


def init_params(key, in_planes, planes, w_mult=2):
    """Deterministic synthetic parameters matching the module's shapes."""
    cmid = int(planes * w_mult)
    k1, k2, k3, k4, k5, k6 = jax.random.split(key, 6)
    w1 = jax.random.normal(k1, (cmid, in_planes, 3, 3), jnp.float32) * 0.1
    g1 = 1.0 + 0.05 * jax.random.normal(k2, (cmid,), jnp.float32)
    b1 = 0.05 * jax.random.normal(k3, (cmid,), jnp.float32)
    w2 = jax.random.normal(k4, (planes, cmid, 3, 3), jnp.float32) * 0.1
    g2 = 1.0 + 0.05 * jax.random.normal(k5, (planes,), jnp.float32)
    b2 = 0.05 * jax.random.normal(k6, (planes,), jnp.float32)
    return (w1, g1, b1, w2, g2, b2)


if __name__ == "__main__":
    key = jax.random.PRNGKey(0)
    k_x, k_p = jax.random.split(key)

    B, Cin, H, W = 2, 4, 16, 16       # input (NCHW, PyTorch convention)
    planes = 8                        # -> Cmid = 16, Cout = 8

    x = jax.random.normal(k_x, (B, Cin, H, W), jnp.float32)
    params = init_params(k_p, Cin, planes, w_mult=2)

    out = upa_lite_block_forward(x, params, cat=False)
    out = jax.block_until_ready(out)

    assert out.shape == (B, planes, H, W), out.shape
    assert bool(jnp.all(jnp.isfinite(out)))

    # Correctness self-check against a pure-JAX reference (loose tolerance to
    # allow for MXU matmul rounding differences).
    ref = jax.block_until_ready(_reference_forward(x, params))
    err = float(jnp.max(jnp.abs(out - ref)))
    assert err < 5e-2, f"max abs error vs reference: {err}"

    print("KERNEL_OK")
</pallas_src>

<mosaic_0001>
module attributes {stable_mosaic.version = 11 : i64} {
  func.func @_upa_block_kernel(%arg0: memref<32x64xf32, #tpu.memory_space<vmem>>, %arg1: memref<32x32xf32, #tpu.memory_space<vmem>>, %arg2: memref<32x32xf32, #tpu.memory_space<vmem>>, %arg3: memref<3x64x256xf32, #tpu.memory_space<vmem>>, %arg4: memref<1x16xf32, #tpu.memory_space<vmem>>, %arg5: memref<1x16xf32, #tpu.memory_space<vmem>>, %arg6: memref<256x16xf32, #tpu.memory_space<vmem>>, %arg7: memref<16x256xf32, #tpu.memory_space<vmem>>, %arg8: memref<3x256x128xf32, #tpu.memory_space<vmem>>, %arg9: memref<1x8xf32, #tpu.memory_space<vmem>>, %arg10: memref<1x8xf32, #tpu.memory_space<vmem>>, %arg11: memref<128x8xf32, #tpu.memory_space<vmem>>, %arg12: memref<8x128xf32, #tpu.memory_space<vmem>>, %arg13: memref<32x128xf32, #tpu.memory_space<vmem>>) attributes {dimension_semantics = [], scalar_prefetch = 0 : i64, scratch_operands = 0 : i64, tpu.core_type = #tpu.core_type<tc>} {
    %c0 = arith.constant 0 : index
    %c0_0 = arith.constant 0 : index
    %0 = vector.load %arg1[%c0, %c0_0] : memref<32x32xf32, #tpu.memory_space<vmem>>, vector<32x32xf32>
    %c0_1 = arith.constant 0 : index
    %c0_2 = arith.constant 0 : index
    %1 = vector.load %arg2[%c0_1, %c0_2] : memref<32x32xf32, #tpu.memory_space<vmem>>, vector<32x32xf32>
    %c0_3 = arith.constant 0 : index
    %c0_4 = arith.constant 0 : index
    %2 = vector.load %arg0[%c0_3, %c0_4] : memref<32x64xf32, #tpu.memory_space<vmem>>, vector<32x64xf32>
    %cst = arith.constant dense<0.000000e+00> : vector<32x64xf32>
    %3 = tpu.matmul %0, %2, %cst {dimension_numbers = #tpu.dot_dimension_numbers<[1], [0], [0], [1], [0, 0, 1, 1], [], []>} : vector<32x32xf32>, vector<32x64xf32>, vector<32x64xf32> -> vector<32x64xf32>
    %cst_5 = arith.constant dense<0.000000e+00> : vector<32x64xf32>
    %4 = tpu.matmul %1, %2, %cst_5 {dimension_numbers = #tpu.dot_dimension_numbers<[1], [0], [0], [1], [0, 0, 1, 1], [], []>} : vector<32x32xf32>, vector<32x64xf32>, vector<32x64xf32> -> vector<32x64xf32>
    %c0_6 = arith.constant 0 : index
    %c0_7 = arith.constant 0 : index
    %c0_8 = arith.constant 0 : index
    %5 = vector.load %arg3[%c0_6, %c0_7, %c0_8] : memref<3x64x256xf32, #tpu.memory_space<vmem>>, vector<1x64x256xf32>
    %6 = vector.shape_cast %5 : vector<1x64x256xf32> to vector<64x256xf32>
    %cst_9 = arith.constant dense<0.000000e+00> : vector<32x256xf32>
    %7 = tpu.matmul %3, %6, %cst_9 {dimension_numbers = #tpu.dot_dimension_numbers<[1], [0], [0], [1], [0, 0, 1, 1], [], []>} : vector<32x64xf32>, vector<64x256xf32>, vector<32x256xf32> -> vector<32x256xf32>
    %c1 = arith.constant 1 : index
    %c0_10 = arith.constant 0 : index
    %c0_11 = arith.constant 0 : index
    %8 = vector.load %arg3[%c1, %c0_10, %c0_11] : memref<3x64x256xf32, #tpu.memory_space<vmem>>, vector<1x64x256xf32>
    %9 = vector.shape_cast %8 : vector<1x64x256xf32> to vector<64x256xf32>
    %cst_12 = arith.constant dense<0.000000e+00> : vector<32x256xf32>
    %10 = tpu.matmul %2, %9, %cst_12 {dimension_numbers = #tpu.dot_dimension_numbers<[1], [0], [0], [1], [0, 0, 1, 1], [], []>} : vector<32x64xf32>, vector<64x256xf32>, vector<32x256xf32> -> vector<32x256xf32>
    %11 = arith.addf %7, %10 : vector<32x256xf32>
    %c2 = arith.constant 2 : index
    %c0_13 = arith.constant 0 : index
    %c0_14 = arith.constant 0 : index
    %12 = vector.load %arg3[%c2, %c0_13, %c0_14] : memref<3x64x256xf32, #tpu.memory_space<vmem>>, vector<1x64x256xf32>
    %13 = vector.shape_cast %12 : vector<1x64x256xf32> to vector<64x256xf32>
    %cst_15 = arith.constant dense<0.000000e+00> : vector<32x256xf32>
    %14 = tpu.matmul %4, %13, %cst_15 {dimension_numbers = #tpu.dot_dimension_numbers<[1], [0], [0], [1], [0, 0, 1, 1], [], []>} : vector<32x64xf32>, vector<64x256xf32>, vector<32x256xf32> -> vector<32x256xf32>
    %15 = arith.addf %11, %14 : vector<32x256xf32>
    %cst_16 = arith.constant dense<0.000000e+00> : vector<256xf32>
    %16 = vector.multi_reduction <add>, %15, %cst_16 [0] : vector<32x256xf32> to vector<256xf32>
    %17 = vector.shape_cast %16 : vector<256xf32> to vector<1x256xf32>
    %c0_17 = arith.constant 0 : index
    %c0_18 = arith.constant 0 : index
    %18 = vector.load %arg6[%c0_17, %c0_18] : memref<256x16xf32, #tpu.memory_space<vmem>>, vector<256x16xf32>
    %cst_19 = arith.constant dense<0.000000e+00> : vector<1x16xf32>
    %19 = tpu.matmul %17, %18, %cst_19 {dimension_numbers = #tpu.dot_dimension_numbers<[1], [0], [0], [1], [0, 0, 1, 1], [], []>} : vector<1x256xf32>, vector<256x16xf32>, vector<1x16xf32> -> vector<1x16xf32>
    %cst_20 = arith.constant 0.001953125 : f32
    %20 = vector.broadcast %cst_20 : f32 to vector<1x16xf32>
    %21 = arith.mulf %19, %20 : vector<1x16xf32>
    %c0_21 = arith.constant 0 : index
    %c0_22 = arith.constant 0 : index
    %22 = vector.load %arg7[%c0_21, %c0_22] : memref<16x256xf32, #tpu.memory_space<vmem>>, vector<16x256xf32>
    %cst_23 = arith.constant dense<0.000000e+00> : vector<1x256xf32>
    %23 = tpu.matmul %21, %22, %cst_23 {dimension_numbers = #tpu.dot_dimension_numbers<[1], [0], [0], [1], [0, 0, 1, 1], [], []>} : vector<1x16xf32>, vector<16x256xf32>, vector<1x256xf32> -> vector<1x256xf32>
    %24 = vector.broadcast %23 : vector<1x256xf32> to vector<32x256xf32>
    %25 = arith.subf %15, %24 : vector<32x256xf32>
    %26 = arith.mulf %25, %25 : vector<32x256xf32>
    %cst_24 = arith.constant dense<0.000000e+00> : vector<256xf32>
    %27 = vector.multi_reduction <add>, %26, %cst_24 [0] : vector<32x256xf32> to vector<256xf32>
    %28 = vector.shape_cast %27 : vector<256xf32> to vector<1x256xf32>
    %c0_25 = arith.constant 0 : index
    %c0_26 = arith.constant 0 : index
    %29 = vector.load %arg6[%c0_25, %c0_26] : memref<256x16xf32, #tpu.memory_space<vmem>>, vector<256x16xf32>
    %cst_27 = arith.constant dense<0.000000e+00> : vector<1x16xf32>
    %30 = tpu.matmul %28, %29, %cst_27 {dimension_numbers = #tpu.dot_dimension_numbers<[1], [0], [0], [1], [0, 0, 1, 1], [], []>} : vector<1x256xf32>, vector<256x16xf32>, vector<1x16xf32> -> vector<1x16xf32>
    %cst_28 = arith.constant 0.001953125 : f32
    %31 = vector.broadcast %cst_28 : f32 to vector<1x16xf32>
    %32 = arith.mulf %30, %31 : vector<1x16xf32>
    %c0_29 = arith.constant 0 : index
    %c0_30 = arith.constant 0 : index
    %33 = vector.load %arg4[%c0_29, %c0_30] : memref<1x16xf32, #tpu.memory_space<vmem>>, vector<1x16xf32>
    %cst_31 = arith.constant 9.99999974E-6 : f32
    %34 = vector.broadcast %cst_31 : f32 to vector<1x16xf32>
    %35 = arith.addf %32, %34 : vector<1x16xf32>
    %36 = math.rsqrt %35 : vector<1x16xf32>
    %37 = arith.mulf %33, %36 : vector<1x16xf32>
    %c0_32 = arith.constant 0 : index
    %c0_33 = arith.constant 0 : index
    %38 = vector.load %arg7[%c0_32, %c0_33] : memref<16x256xf32, #tpu.memory_space<vmem>>, vector<16x256xf32>
    %cst_34 = arith.constant dense<0.000000e+00> : vector<1x256xf32>
    %39 = tpu.matmul %37, %38, %cst_34 {dimension_numbers = #tpu.dot_dimension_numbers<[1], [0], [0], [1], [0, 0, 1, 1], [], []>} : vector<1x16xf32>, vector<16x256xf32>, vector<1x256xf32> -> vector<1x256xf32>
    %40 = vector.broadcast %39 : vector<1x256xf32> to vector<32x256xf32>
    %41 = arith.mulf %25, %40 : vector<32x256xf32>
    %c0_35 = arith.constant 0 : index
    %c0_36 = arith.constant 0 : index
    %42 = vector.load %arg5[%c0_35, %c0_36] : memref<1x16xf32, #tpu.memory_space<vmem>>, vector<1x16xf32>
    %c0_37 = arith.constant 0 : index
    %c0_38 = arith.constant 0 : index
    %43 = vector.load %arg7[%c0_37, %c0_38] : memref<16x256xf32, #tpu.memory_space<vmem>>, vector<16x256xf32>
    %cst_39 = arith.constant dense<0.000000e+00> : vector<1x256xf32>
    %44 = tpu.matmul %42, %43, %cst_39 {dimension_numbers = #tpu.dot_dimension_numbers<[1], [0], [0], [1], [0, 0, 1, 1], [], []>} : vector<1x16xf32>, vector<16x256xf32>, vector<1x256xf32> -> vector<1x256xf32>
    %45 = vector.broadcast %44 : vector<1x256xf32> to vector<32x256xf32>
    %46 = arith.addf %41, %45 : vector<32x256xf32>
    %cst_40 = arith.constant 0.000000e+00 : f32
    %47 = vector.broadcast %cst_40 : f32 to vector<32x256xf32>
    %48 = arith.maximumf %46, %47 : vector<32x256xf32>
    %cst_41 = arith.constant dense<0.000000e+00> : vector<32x256xf32>
    %49 = tpu.matmul %0, %48, %cst_41 {dimension_numbers = #tpu.dot_dimension_numbers<[1], [0], [0], [1], [0, 0, 1, 1], [], []>} : vector<32x32xf32>, vector<32x256xf32>, vector<32x256xf32> -> vector<32x256xf32>
    %cst_42 = arith.constant dense<0.000000e+00> : vector<32x256xf32>
    %50 = tpu.matmul %1, %48, %cst_42 {dimension_numbers = #tpu.dot_dimension_numbers<[1], [0], [0], [1], [0, 0, 1, 1], [], []>} : vector<32x32xf32>, vector<32x256xf32>, vector<32x256xf32> -> vector<32x256xf32>
    %c0_43 = arith.constant 0 : index
    %c0_44 = arith.constant 0 : index
    %c0_45 = arith.constant 0 : index
    %51 = vector.load %arg8[%c0_43, %c0_44, %c0_45] : memref<3x256x128xf32, #tpu.memory_space<vmem>>, vector<1x256x128xf32>
    %52 = vector.shape_cast %51 : vector<1x256x128xf32> to vector<256x128xf32>
    %cst_46 = arith.constant dense<0.000000e+00> : vector<32x128xf32>
    %53 = tpu.matmul %49, %52, %cst_46 {dimension_numbers = #tpu.dot_dimension_numbers<[1], [0], [0], [1], [0, 0, 1, 1], [], []>} : vector<32x256xf32>, vector<256x128xf32>, vector<32x128xf32> -> vector<32x128xf32>
    %c1_47 = arith.constant 1 : index
    %c0_48 = arith.constant 0 : index
    %c0_49 = arith.constant 0 : index
    %54 = vector.load %arg8[%c1_47, %c0_48, %c0_49] : memref<3x256x128xf32, #tpu.memory_space<vmem>>, vector<1x256x128xf32>
    %55 = vector.shape_cast %54 : vector<1x256x128xf32> to vector<256x128xf32>
    %cst_50 = arith.constant dense<0.000000e+00> : vector<32x128xf32>
    %56 = tpu.matmul %48, %55, %cst_50 {dimension_numbers = #tpu.dot_dimension_numbers<[1], [0], [0], [1], [0, 0, 1, 1], [], []>} : vector<32x256xf32>, vector<256x128xf32>, vector<32x128xf32> -> vector<32x128xf32>
    %57 = arith.addf %53, %56 : vector<32x128xf32>
    %c2_51 = arith.constant 2 : index
    %c0_52 = arith.constant 0 : index
    %c0_53 = arith.constant 0 : index
    %58 = vector.load %arg8[%c2_51, %c0_52, %c0_53] : memref<3x256x128xf32, #tpu.memory_space<vmem>>, vector<1x256x128xf32>
    %59 = vector.shape_cast %58 : vector<1x256x128xf32> to vector<256x128xf32>
    %cst_54 = arith.constant dense<0.000000e+00> : vector<32x128xf32>
    %60 = tpu.matmul %50, %59, %cst_54 {dimension_numbers = #tpu.dot_dimension_numbers<[1], [0], [0], [1], [0, 0, 1, 1], [], []>} : vector<32x256xf32>, vector<256x128xf32>, vector<32x128xf32> -> vector<32x128xf32>
    %61 = arith.addf %57, %60 : vector<32x128xf32>
    %cst_55 = arith.constant dense<0.000000e+00> : vector<128xf32>
    %62 = vector.multi_reduction <add>, %61, %cst_55 [0] : vector<32x128xf32> to vector<128xf32>
    %63 = vector.shape_cast %62 : vector<128xf32> to vector<1x128xf32>
    %c0_56 = arith.constant 0 : index
    %c0_57 = arith.constant 0 : index
    %64 = vector.load %arg11[%c0_56, %c0_57] : memref<128x8xf32, #tpu.memory_space<vmem>>, vector<128x8xf32>
    %cst_58 = arith.constant dense<0.000000e+00> : vector<1x8xf32>
    %65 = tpu.matmul %63, %64, %cst_58 {dimension_numbers = #tpu.dot_dimension_numbers<[1], [0], [0], [1], [0, 0, 1, 1], [], []>} : vector<1x128xf32>, vector<128x8xf32>, vector<1x8xf32> -> vector<1x8xf32>
    %cst_59 = arith.constant 0.001953125 : f32
    %66 = vector.broadcast %cst_59 : f32 to vector<1x8xf32>
    %67 = arith.mulf %65, %66 : vector<1x8xf32>
    %c0_60 = arith.constant 0 : index
    %c0_61 = arith.constant 0 : index
    %68 = vector.load %arg12[%c0_60, %c0_61] : memref<8x128xf32, #tpu.memory_space<vmem>>, vector<8x128xf32>
    %cst_62 = arith.constant dense<0.000000e+00> : vector<1x128xf32>
    %69 = tpu.matmul %67, %68, %cst_62 {dimension_numbers = #tpu.dot_dimension_numbers<[1], [0], [0], [1], [0, 0, 1, 1], [], []>} : vector<1x8xf32>, vector<8x128xf32>, vector<1x128xf32> -> vector<1x128xf32>
    %70 = vector.broadcast %69 : vector<1x128xf32> to vector<32x128xf32>
    %71 = arith.subf %61, %70 : vector<32x128xf32>
    %72 = arith.mulf %71, %71 : vector<32x128xf32>
    %cst_63 = arith.constant dense<0.000000e+00> : vector<128xf32>
    %73 = vector.multi_reduction <add>, %72, %cst_63 [0] : vector<32x128xf32> to vector<128xf32>
    %74 = vector.shape_cast %73 : vector<128xf32> to vector<1x128xf32>
    %c0_64 = arith.constant 0 : index
    %c0_65 = arith.constant 0 : index
    %75 = vector.load %arg11[%c0_64, %c0_65] : memref<128x8xf32, #tpu.memory_space<vmem>>, vector<128x8xf32>
    %cst_66 = arith.constant dense<0.000000e+00> : vector<1x8xf32>
    %76 = tpu.matmul %74, %75, %cst_66 {dimension_numbers = #tpu.dot_dimension_numbers<[1], [0], [0], [1], [0, 0, 1, 1], [], []>} : vector<1x128xf32>, vector<128x8xf32>, vector<1x8xf32> -> vector<1x8xf32>
    %cst_67 = arith.constant 0.001953125 : f32
    %77 = vector.broadcast %cst_67 : f32 to vector<1x8xf32>
    %78 = arith.mulf %76, %77 : vector<1x8xf32>
    %c0_68 = arith.constant 0 : index
    %c0_69 = arith.constant 0 : index
    %79 = vector.load %arg9[%c0_68, %c0_69] : memref<1x8xf32, #tpu.memory_space<vmem>>, vector<1x8xf32>
    %cst_70 = arith.constant 9.99999974E-6 : f32
    %80 = vector.broadcast %cst_70 : f32 to vector<1x8xf32>
    %81 = arith.addf %78, %80 : vector<1x8xf32>
    %82 = math.rsqrt %81 : vector<1x8xf32>
    %83 = arith.mulf %79, %82 : vector<1x8xf32>
    %c0_71 = arith.constant 0 : index
    %c0_72 = arith.constant 0 : index
    %84 = vector.load %arg12[%c0_71, %c0_72] : memref<8x128xf32, #tpu.memory_space<vmem>>, vector<8x128xf32>
    %cst_73 = arith.constant dense<0.000000e+00> : vector<1x128xf32>
    %85 = tpu.matmul %83, %84, %cst_73 {dimension_numbers = #tpu.dot_dimension_numbers<[1], [0], [0], [1], [0, 0, 1, 1], [], []>} : vector<1x8xf32>, vector<8x128xf32>, vector<1x128xf32> -> vector<1x128xf32>
    %86 = vector.broadcast %85 : vector<1x128xf32> to vector<32x128xf32>
    %87 = arith.mulf %71, %86 : vector<32x128xf32>
    %c0_74 = arith.constant 0 : index
    %c0_75 = arith.constant 0 : index
    %88 = vector.load %arg10[%c0_74, %c0_75] : memref<1x8xf32, #tpu.memory_space<vmem>>, vector<1x8xf32>
    %c0_76 = arith.constant 0 : index
    %c0_77 = arith.constant 0 : index
    %89 = vector.load %arg12[%c0_76, %c0_77] : memref<8x128xf32, #tpu.memory_space<vmem>>, vector<8x128xf32>
    %cst_78 = arith.constant dense<0.000000e+00> : vector<1x128xf32>
    %90 = tpu.matmul %88, %89, %cst_78 {dimension_numbers = #tpu.dot_dimension_numbers<[1], [0], [0], [1], [0, 0, 1, 1], [], []>} : vector<1x8xf32>, vector<8x128xf32>, vector<1x128xf32> -> vector<1x128xf32>
    %91 = vector.broadcast %90 : vector<1x128xf32> to vector<32x128xf32>
    %92 = arith.addf %87, %91 : vector<32x128xf32>
    %cst_79 = arith.constant 0.000000e+00 : f32
    %93 = vector.broadcast %cst_79 : f32 to vector<32x128xf32>
    %94 = arith.maximumf %92, %93 : vector<32x128xf32>
    %c0_80 = arith.constant 0 : index
    %c0_81 = arith.constant 0 : index
    %95 = vector.load %arg13[%c0_80, %c0_81] : memref<32x128xf32, #tpu.memory_space<vmem>>, vector<32x128xf32>
    tpu.vector_store %arg13[%c0_80, %c0_81], %94 {strides = array<i32>} : memref<32x128xf32, #tpu.memory_space<vmem>>, vector<32x128xf32>,
    return
  }
}

</mosaic_0001>

<bundles_post_ra>
// kernel: tile.14
= control target key start
LH: loop header
LB: loop body
LE: loop exit
PB: predicated region body
PF: predicated region fallthrough
CT: control target
= control target key end

     0   :  { %s60_s6 = smov 3  ;;  %s63_s7 = smov 12  ;;  %vm65_vm0 = vcmask 1043458   ;;  %vm70_vm1 = vcmask 1045508   ;;  %vm75_vm2 = vcmask 1047558   ;;  %vm4_vm3 = vcmask 1047556   ;;  %s1502_s0 = inlined_call_operand.vmem [shape: f32[16,16,16], index: 0, kind: input, shape index: {}]   ;;  %s1503_s1 = inlined_call_operand.vmem [shape: f32[16,256], index: 1, kind: output, shape index: {}]  }
   0x1   :  { %v717_v0 = vld [vmem:[%s1502_s0 + $0x7] ss:$16 sm:%s60_s6]   ;;  %s68_s12 = smov 48  ;;  %s73_s13 = smov 192  ;;  %vm6_vm4 = vcmask 130048   ;;  %vm79_vm5 = vcmask 1048448  }
   0x2   :  { %v718_v1 = vld [vmem:[%s1502_s0 + $0x7] ss:$16 sm:%s63_s7]   ;;  %s105_s18 = smov 3  ;;  %s108_s21 = smov 12  ;;  %vm170_vm6 = vcmask 917248   ;;  %vm261_vm7 = vcmask 786048  }
   0x3   :  { %v66_v2 = vsel %vm65_vm0, %v718_v1, %v717_v0  ;;  %v719_v3 = vld [vmem:[%s1502_s0 + $0x7] ss:$16 sm:%s68_s12]   ;;  %s113_s22 = smov 48  ;;  %s118_s27 = smov 192  ;;  %vm352_vm8 = vcmask 654848   ;;  %vm443_vm9 = vcmask 523648  }
   0x4   :  { %v720_v4 = vld [vmem:[%s1502_s0 + $0x7] ss:$16 sm:%s73_s13]   ;;  %v71_v5 = vsel %vm70_vm1, %v719_v3, %v66_v2  ;;  %s82_s28 = smov 3  ;;  %s857_s29 = smov 112   ;;  %vm534_vm10 = vcmask 392448   ;;  %vm625_vm11 = vcmask 261248  }
   0x5   :  { %v726_v6 = vld [vmem:[%s1502_s0 + $0x87] ss:$16 sm:%s105_s18]   ;;  %v76_v7 = vsel %vm75_vm2, %v720_v4, %v71_v5  ;;  %s85_s3 = smov 12  ;;  %s90_s4 = smov 48  ;;  %v721_v13 = vld [vmem:[%s1502_s0 + $0xf] ss:$16 sm:%s82_s28]  }
   0x6   :  { %v727_v8 = vld [vmem:[%s1502_s0 + $0x87] ss:$16 sm:%s108_s21]   ;;  %77 = vrot.lane.b32.xlu0 %v76_v7, %s857_s29  ;;  %s95_s9 = smov 192  ;;  %s128_s10 = smov 3 }
   0x7   :  { %v728_v9 = vld [vmem:[%s1502_s0 + $0x87] ss:$16 sm:%s113_s22]   ;;  %v111_v10 = vsel %vm65_vm0, %v727_v8, %v726_v6  ;;  %v722_v14 = vld [vmem:[%s1502_s0 + $0xf] ss:$16 sm:%s85_s3]   ;;  %s131_s15 = smov 12  ;;  %s136_s16 = smov 48 }
   0x8   :  { %v729_v11 = vld [vmem:[%s1502_s0 + $0x87] ss:$16 sm:%s118_s27]   ;;  %v116_v12 = vsel %vm70_vm1, %v728_v9, %v111_v10  ;;  %v88_v16 = vsel %vm65_vm0, %v722_v14, %v721_v13  ;;  %v723_v17 = vld [vmem:[%s1502_s0 + $0xf] ss:$16 sm:%s90_s4]   ;;  %s141_s19 = smov 192  ;;  %s196_s24 = smov 3 }
   0x9   :  { %v121_v15 = vsel %vm75_vm2, %v729_v11, %v116_v12  ;;  %v724_v18 = vld [vmem:[%s1502_s0 + $0xf] ss:$16 sm:%s95_s9]   ;;  %v93_v19 = vsel %vm70_vm1, %v723_v17, %v88_v16  ;;  %s199_s25 = smov 12  ;;  %v745_v26 = vld [vmem:[%s1502_s0 + $0x86] ss:$16 sm:%s196_s24]   ;;  %s204_s2 = smov 48 }
   0xa   :  { %122 = vrot.lane.b32.xlu1 %v121_v15, %s857_s29  ;;  %v731_v20 = vld [vmem:[%s1502_s0 + $0x8f] ss:$16 sm:%s128_s10]   ;;  %v98_v23 = vsel %vm75_vm2, %v724_v18, %v93_v19  ;;  %s219_s5 = smov 3  ;;  %s222_s6 = smov 12 }
   0xb   :  { %v732_v21 = vld [vmem:[%s1502_s0 + $0x8f] ss:$16 sm:%s131_s15]   ;;  %v746_v28 = vld [vmem:[%s1502_s0 + $0x86] ss:$16 sm:%s199_s25]   ;;  %s209_s9 = smov 192  ;;  %s227_s12 = smov 48 }
   0xc   :  { %v733_v22 = vld [vmem:[%s1502_s0 + $0x8f] ss:$16 sm:%s136_s16]   ;;  %v134_v24 = vsel %vm65_vm0, %v732_v21, %v731_v20  ;;  %v202_v29 = vsel %vm65_vm0, %v746_v28, %v745_v26  ;;  %v747_v30 = vld [vmem:[%s1502_s0 + $0x86] ss:$16 sm:%s204_s2]   ;;  %s232_s15 = smov 192  ;;  %s264_s16 = smov 3 }
   0xd   :  { %v734_v25 = vld [vmem:[%s1502_s0 + $0x8f] ss:$16 sm:%s141_s19]   ;;  %v139_v27 = vsel %vm70_vm1, %v733_v22, %v134_v24  ;;  %v750_v31 = vld [vmem:[%s1502_s0 + $0x8e] ss:$16 sm:%s219_s5]   ;;  %s267_s17 = smov 12  ;;  %v207_v34 = vsel %vm70_vm1, %v747_v30, %v202_v29  ;;  %s272_s22 = smov 48 }
   0xe   :  { %99 = vrot.lane.b32.xlu0 %v98_v23, %s857_s29  ;;  %v144_v32 = vsel %vm75_vm2, %v734_v25, %v139_v27  ;;  %v751_v33 = vld [vmem:[%s1502_s0 + $0x8e] ss:$16 sm:%s222_s6]   ;;  %s151_s23 = smov 3  ;;  %s154_s27 = smov 12 }
   0xf   :  { %v748_v35 = vld [vmem:[%s1502_s0 + $0x86] ss:$16 sm:%s209_s9]   ;;  %v225_v36 = vsel %vm65_vm0, %v751_v33, %v750_v31  ;;  %v752_v37 = vld [vmem:[%s1502_s0 + $0x8e] ss:$16 sm:%s227_s12]   ;;  %s159_s28 = smov 48  ;;  %s164_s5 = smov 192 }
  0x10   :  { %v753_v38 = vld [vmem:[%s1502_s0 + $0x8e] ss:$16 sm:%s232_s15]   ;;  %v759_v39 = vld [vmem:[%s1502_s0 + $0xd] ss:$16 sm:%s264_s16]   ;;  %s287_s6 = smov 3  ;;  %v212_v42 = vsel %vm75_vm2, %v748_v35, %v207_v34  ;;  %v230_v43 = vsel %vm70_vm1, %v752_v37, %v225_v36  ;;  %s290_s11 = smov 12 }
  0x11   :  { %v760_v40 = vld [vmem:[%s1502_s0 + $0xd] ss:$16 sm:%s267_s17]   ;;  %v736_v41 = vld [vmem:[%s1502_s0 + $0x6] ss:$16 sm:%s151_s23]   ;;  %s277_s14 = smov 192  ;;  %s295_s21 = smov 48  ;;  %v235_v53 = vsel %vm75_vm2, %v753_v38, %v230_v43 }
  0x12   :  { %145 = vrot.lane.b32.xlu1 %v144_v32, %s857_s29  ;;  %v737_v44 = vld [vmem:[%s1502_s0 + $0x6] ss:$16 sm:%s154_s27]   ;;  %v270_v49 = vsel %vm65_vm0, %v760_v40, %v759_v39  ;;  %s858_s23 = smov 96   ;;  %s300_s29 = smov 192 }
  0x13   :  { %v738_v45 = vld [vmem:[%s1502_s0 + $0x6] ss:$16 sm:%s159_s28]   ;;  %v761_v46 = vld [vmem:[%s1502_s0 + $0xd] ss:$16 sm:%s272_s22]   ;;  %v157_v47 = vsel %vm65_vm0, %v737_v44, %v736_v41  ;;  %s333_s22 = smov 3  ;;  %s336_s24 = smov 12 }
  0x14   :  { %v739_v48 = vld [vmem:[%s1502_s0 + $0x6] ss:$16 sm:%s164_s5]   ;;  %v162_v50 = vsel %vm70_vm1, %v738_v45, %v157_v47  ;;  %v764_v51 = vld [vmem:[%s1502_s0 + $0x85] ss:$16 sm:%s287_s6]   ;;  %s173_s27 = smov 3  ;;  %s176_s28 = smov 12  ;;  %v275_v56 = vsel %vm70_vm1, %v761_v46, %v270_v49 }
  0x15   :  { %v765_v52 = vld [vmem:[%s1502_s0 + $0x85] ss:$16 sm:%s290_s11]   ;;  %v167_v54 = vsel %vm75_vm2, %v739_v48, %v162_v50  ;;  %v762_v55 = vld [vmem:[%s1502_s0 + $0xd] ss:$16 sm:%s277_s14]   ;;  %s181_s5 = smov 48  ;;  %s186_s6 = smov 192 }
  0x16   :  { %213 = vrot.lane.b32.xlu0 %v212_v42, %s858_s23  ;;  %168 = vrot.lane.b32.xlu2 %v167_v54, %s858_s23  ;;  %v293_v57 = vsel %vm65_vm0, %v765_v52, %v764_v51  ;;  %v766_v58 = vld [vmem:[%s1502_s0 + $0x85] ss:$16 sm:%s295_s21]   ;;  %s341_s11 = smov 48  ;;  %s355_s16 = smov 3  ;;  %v280_v0 = vsel %vm75_vm2, %v762_v55, %v275_v56 }
  0x17   :  { %v774_v59 = vld [vmem:[%s1502_s0 + $0x4] ss:$16 sm:%s333_s22]   ;;  %v767_v60 = vld [vmem:[%s1502_s0 + $0x85] ss:$16 sm:%s300_s29]   ;;  %s358_s17 = smov 12  ;;  %v298_v1 = vsel %vm70_vm1, %v766_v58, %v293_v57  ;;  %s346_s18 = smov 192 }
  0x18   :  { %v775_v61 = vld [vmem:[%s1502_s0 + $0x4] ss:$16 sm:%s336_s24]   ;;  %v740_v62 = vld [vmem:[%s1502_s0 + $0xe] ss:$16 sm:%s173_s27]   ;;  %s363_s25 = smov 48  ;;  %s401_s2 = smov 3  ;;  %v303_v11 = vsel %vm75_vm2, %v767_v60, %v298_v1 }
  0x19   :  { %v741_v63 = vld [vmem:[%s1502_s0 + $0xe] ss:$16 sm:%s176_s28]   ;;  %v776_v5 = vld [vmem:[%s1502_s0 + $0x4] ss:$16 sm:%s341_s11]   ;;  %v339_v7 = vsel %vm65_vm0, %v775_v61, %v774_v59  ;;  %s404_s3 = smov 12  ;;  %s859_s4 = smov 80  }
  0x1a   :  { %236 = vrot.lane.b32.xlu1 %v235_v53, %s858_s23  ;;  %v179_v2 = vsel %vm65_vm0, %v741_v63, %v740_v62  ;;  %v742_v3 = vld [vmem:[%s1502_s0 + $0xe] ss:$16 sm:%s181_s5]   ;;  %s242_s7 = smov 3  ;;  %s245_s9 = smov 12  ;;  %v344_v14 = vsel %vm70_vm1, %v776_v5, %v339_v7 }
  0x1b   :  { %v743_v4 = vld [vmem:[%s1502_s0 + $0xe] ss:$16 sm:%s186_s6]   ;;  %v184_v6 = vsel %vm70_vm1, %v742_v3, %v179_v2  ;;  %v778_v9 = vld [vmem:[%s1502_s0 + $0xc] ss:$16 sm:%s355_s16]   ;;  %s250_s10 = smov 48  ;;  %s368_s11 = smov 192 }
  0x1c   :  { %v189_v8 = vsel %vm75_vm2, %v743_v4, %v184_v6  ;;  %v779_v10 = vld [vmem:[%s1502_s0 + $0xc] ss:$16 sm:%s358_s17]   ;;  %v777_v12 = vld [vmem:[%s1502_s0 + $0x4] ss:$16 sm:%s346_s18]   ;;  %s255_s16 = smov 192  ;;  %s409_s17 = smov 48 }
  0x1d   :  { %v780_v13 = vld [vmem:[%s1502_s0 + $0xc] ss:$16 sm:%s363_s25]   ;;  %v361_v15 = vsel %vm65_vm0, %v779_v10, %v778_v9  ;;  %v755_v18 = vld [vmem:[%s1502_s0 + $0x5] ss:$16 sm:%s242_s7]   ;;  %s424_s24 = smov 3  ;;  %s427_s25 = smov 12  ;;  %v349_v21 = vsel %vm75_vm2, %v777_v12, %v344_v14 }
  0x1e   :  { %281 = vrot.lane.b32.xlu0 %v280_v0, %s859_s4  ;;  %190 = vrot.lane.b32.xlu2 %v189_v8, %s858_s23  ;;  %v788_v16 = vld [vmem:[%s1502_s0 + $0x8c] ss:$16 sm:%s401_s2]   ;;  %v366_v22 = vsel %vm70_vm1, %v780_v13, %v361_v15  ;;  %s414_s28 = smov 192  ;;  %s432_s6 = smov 48 }
  0x1f   :  { %v789_v17 = vld [vmem:[%s1502_s0 + $0x8c] ss:$16 sm:%s404_s3]   ;;  %v756_v19 = vld [vmem:[%s1502_s0 + $0x5] ss:$16 sm:%s245_s9]   ;;  %s469_s7 = smov 3  ;;  %s310_s12 = smov 3 }
  0x20   :  { %v757_v20 = vld [vmem:[%s1502_s0 + $0x5] ss:$16 sm:%s250_s10]   ;;  %v781_v23 = vld [vmem:[%s1502_s0 + $0xc] ss:$16 sm:%s368_s11]   ;;  %v248_v24 = vsel %vm65_vm0, %v756_v19, %v755_v18  ;;  %v407_v28 = vsel %vm65_vm0, %v789_v17, %v788_v16  ;;  %s472_s11 = smov 12  ;;  %s860_s13 = smov 64  }
  0x21   :  { %v758_v25 = vld [vmem:[%s1502_s0 + $0x5] ss:$16 sm:%s255_s16]   ;;  %v790_v26 = vld [vmem:[%s1502_s0 + $0x8c] ss:$16 sm:%s409_s17]   ;;  %v253_v27 = vsel %vm70_vm1, %v757_v20, %v248_v24  ;;  %v371_v32 = vsel %vm75_vm2, %v781_v23, %v366_v22  ;;  %s313_s16 = smov 12  ;;  %s318_s19 = smov 48 }
  0x22   :  { %304 = vrot.lane.b32.xlu1 %v303_v11, %s859_s4  ;;  %v258_v29 = vsel %vm75_vm2, %v758_v25, %v253_v27  ;;  %v793_v30 = vld [vmem:[%s1502_s0 + $0x3] ss:$16 sm:%s424_s24]   ;;  %s323_s20 = smov 192  ;;  %v412_v35 = vsel %vm70_vm1, %v790_v26, %v407_v28  ;;  %s437_s21 = smov 192 }
  0x23   :  { %v794_v31 = vld [vmem:[%s1502_s0 + $0x3] ss:$16 sm:%s427_s25]   ;;  %v791_v33 = vld [vmem:[%s1502_s0 + $0x8c] ss:$16 sm:%s414_s28]   ;;  %s477_s28 = smov 48  ;;  %s492_s23 = smov 3 }
  0x24   :  { %v795_v34 = vld [vmem:[%s1502_s0 + $0x3] ss:$16 sm:%s432_s6]   ;;  %v430_v36 = vsel %vm65_vm0, %v794_v31, %v793_v30  ;;  %v769_v39 = vld [vmem:[%s1502_s0 + $0x8d] ss:$16 sm:%s310_s12]   ;;  %s495_s8 = smov 12  ;;  %v417_v44 = vsel %vm75_vm2, %v791_v33, %v412_v35  ;;  %s500_s15 = smov 48 }
  0x25   :  { %v802_v37 = vld [vmem:[%s1502_s0 + $0x83] ss:$16 sm:%s469_s7]   ;;  %v770_v40 = vld [vmem:[%s1502_s0 + $0x8d] ss:$16 sm:%s313_s16]   ;;  %v435_v45 = vsel %vm70_vm1, %v795_v34, %v430_v36  ;;  %s537_s16 = smov 3  ;;  %s381_s22 = smov 12 }
  0x26   :  { %350 = vrot.lane.b32.xlu0 %v349_v21, %s860_s13  ;;  %259 = vrot.lane.b32.xlu2 %v258_v29, %s859_s4  ;;  %v803_v38 = vld [vmem:[%s1502_s0 + $0x83] ss:$16 sm:%s472_s11]   ;;  %v316_v41 = vsel %vm65_vm0, %v770_v40, %v769_v39  ;;  %s482_s11 = smov 192  ;;  %s386_s25 = smov 48 }
  0x27   :  { %v771_v42 = vld [vmem:[%s1502_s0 + $0x8d] ss:$16 sm:%s318_s19]   ;;  %v796_v46 = vld [vmem:[%s1502_s0 + $0x3] ss:$16 sm:%s437_s21]   ;;  %v475_v50 = vsel %vm65_vm0, %v803_v38, %v802_v37  ;;  %s378_s21 = smov 3  ;;  %s540_s27 = smov 12 }
  0x28   :  { %v772_v43 = vld [vmem:[%s1502_s0 + $0x8d] ss:$16 sm:%s323_s20]   ;;  %v321_v47 = vsel %vm70_vm1, %v771_v42, %v316_v41  ;;  %v804_v48 = vld [vmem:[%s1502_s0 + $0x83] ss:$16 sm:%s477_s28]   ;;  %v440_v53 = vsel %vm75_vm2, %v796_v46, %v435_v45  ;;  %s391_s28 = smov 192  ;;  %s505_s30 = smov 192 }
  0x29   :  { %v326_v49 = vsel %vm75_vm2, %v772_v43, %v321_v47  ;;  %v807_v51 = vld [vmem:[%s1502_s0 + $0x8b] ss:$16 sm:%s492_s23]   ;;  %v805_v54 = vld [vmem:[%s1502_s0 + $0x83] ss:$16 sm:%s482_s11]   ;;  %v480_v56 = vsel %vm70_vm1, %v804_v48, %v475_v50  ;;  %s545_s9 = smov 48  ;;  %s560_s17 = smov 3 }
  0x2a   :  { %372 = vrot.lane.b32.xlu1 %v371_v32, %s860_s13  ;;  %v808_v52 = vld [vmem:[%s1502_s0 + $0x8b] ss:$16 sm:%s495_s8]   ;;  %s861_s8 = smov 48   ;;  %s563_s18 = smov 12  ;;  %v485_v2 = vsel %vm75_vm2, %v805_v54, %v480_v56 }
  0x2b   :  { %v809_v55 = vld [vmem:[%s1502_s0 + $0x8b] ss:$16 sm:%s500_s15]   ;;  %v498_v57 = vsel %vm65_vm0, %v808_v52, %v807_v51  ;;  %v816_v58 = vld [vmem:[%s1502_s0 + $0xa] ss:$16 sm:%s537_s16]   ;;  %s454_s2 = smov 48  ;;  %s459_s23 = smov 192 }
  0x2c   :  { %v783_v59 = vld [vmem:[%s1502_s0 + $0x84] ss:$16 sm:%s378_s21]   ;;  %v817_v63 = vld [vmem:[%s1502_s0 + $0xa] ss:$16 sm:%s540_s27]   ;;  %v503_v3 = vsel %vm70_vm1, %v809_v55, %v498_v57  ;;  %s550_s21 = smov 192  ;;  %s573_s12 = smov 192 }
  0x2d   :  { %v784_v60 = vld [vmem:[%s1502_s0 + $0x84] ss:$16 sm:%s381_s22]   ;;  %v810_v4 = vld [vmem:[%s1502_s0 + $0x8b] ss:$16 sm:%s505_s30]   ;;  %s568_s22 = smov 48  ;;  %v543_v7 = vsel %vm65_vm0, %v817_v63, %v816_v58  ;;  %s449_s30 = smov 12 }
  0x2e   :  { %418 = vrot.lane.b32.xlu0 %v417_v44, %s860_s13  ;;  %327 = vrot.lane.b32.xlu2 %v326_v49, %s859_s4  ;;  %v384_v61 = vsel %vm65_vm0, %v784_v60, %v783_v59  ;;  %v785_v62 = vld [vmem:[%s1502_s0 + $0x84] ss:$16 sm:%s386_s25]   ;;  %s446_s25 = smov 3  ;;  %v508_v10 = vsel %vm75_vm2, %v810_v4, %v503_v3  ;;  %s631_s4 = smov 12 }
  0x2f   :  { %v389_v0 = vsel %vm70_vm1, %v785_v62, %v384_v61  ;;  %v786_v1 = vld [vmem:[%s1502_s0 + $0x84] ss:$16 sm:%s391_s28]   ;;  %v818_v5 = vld [vmem:[%s1502_s0 + $0xa] ss:$16 sm:%s545_s9]   ;;  %s609_s9 = smov 12  ;;  %s619_s28 = smov 192 }
  0x30   :  { %v394_v6 = vsel %vm75_vm2, %v786_v1, %v389_v0  ;;  %v821_v8 = vld [vmem:[%s1502_s0 + $0x82] ss:$16 sm:%s560_s17]   ;;  %v819_v11 = vld [vmem:[%s1502_s0 + $0xa] ss:$16 sm:%s550_s21]   ;;  %v548_v14 = vsel %vm70_vm1, %v818_v5, %v543_v7  ;;  %s518_s5 = smov 12  ;;  %s523_s10 = smov 48 }
  0x31   :  { %v822_v9 = vld [vmem:[%s1502_s0 + $0x82] ss:$16 sm:%s563_s18]   ;;  %v797_v13 = vld [vmem:[%s1502_s0 + $0xb] ss:$16 sm:%s446_s25]   ;;  %s614_s18 = smov 48  ;;  %s628_s25 = smov 3  ;;  %v553_v23 = vsel %vm75_vm2, %v819_v11, %v548_v14 }
  0x32   :  { %441 = vrot.lane.b32.xlu1 %v440_v53, %s861_s8  ;;  %v823_v12 = vld [vmem:[%s1502_s0 + $0x82] ss:$16 sm:%s568_s22]   ;;  %v566_v15 = vsel %vm65_vm0, %v822_v9, %v821_v8  ;;  %s862_s11 = smov 32   ;;  %s641_s15 = smov 192 }
  0x33   :  { %v798_v16 = vld [vmem:[%s1502_s0 + $0xb] ss:$16 sm:%s449_s30]   ;;  %v832_v21 = vld [vmem:[%s1502_s0 + $0x1] ss:$16 sm:%s609_s9]   ;;  %v571_v24 = vsel %vm70_vm1, %v823_v12, %v566_v15  ;;  %s515_s30 = smov 3  ;;  %s636_s9 = smov 48 }
  0x34   :  { %v799_v17 = vld [vmem:[%s1502_s0 + $0xb] ss:$16 sm:%s454_s2]   ;;  %v452_v18 = vsel %vm65_vm0, %v798_v16, %v797_v13  ;;  %v824_v25 = vld [vmem:[%s1502_s0 + $0x82] ss:$16 sm:%s573_s12]   ;;  %s677_s19 = smov 12  ;;  %s586_s26 = smov 12 }
  0x35   :  { %v800_v19 = vld [vmem:[%s1502_s0 + $0xb] ss:$16 sm:%s459_s23]   ;;  %v457_v22 = vsel %vm70_vm1, %v799_v17, %v452_v18  ;;  %v833_v26 = vld [vmem:[%s1502_s0 + $0x1] ss:$16 sm:%s614_s18]   ;;  %v576_v31 = vsel %vm75_vm2, %v824_v25, %v571_v24  ;;  %s528_s18 = smov 192  ;;  %s682_s23 = smov 48 }
  0x36   :  { %486 = vrot.lane.b32.xlu0 %v485_v2, %s861_s8  ;;  %395 = vrot.lane.b32.xlu2 %v394_v6, %s860_s13  ;;  %s606_s13 = smov 3  ;;  %v462_v27 = vsel %vm75_vm2, %v800_v19, %v457_v22  ;;  %v835_v29 = vld [vmem:[%s1502_s0 + $0x9] ss:$16 sm:%s628_s25]   ;;  %s591_s14 = smov 48 }
  0x37   :  { %v831_v20 = vld [vmem:[%s1502_s0 + $0x1] ss:$16 sm:%s606_s13]   ;;  %v836_v30 = vld [vmem:[%s1502_s0 + $0x9] ss:$16 sm:%s631_s4]   ;;  %s583_s4 = smov 3  ;;  %s687_s17 = smov 192 }
  0x38   :  { %v612_v28 = vsel %vm65_vm0, %v832_v21, %v831_v20  ;;  %v834_v32 = vld [vmem:[%s1502_s0 + $0x1] ss:$16 sm:%s619_s28]   ;;  %v812_v33 = vld [vmem:[%s1502_s0 + $0x2] ss:$16 sm:%s515_s30]   ;;  %v634_v36 = vsel %vm65_vm0, %v836_v30, %v835_v29  ;;  %s596_s20 = smov 192  ;;  %s651_s29 = smov 3 }
  0x39   :  { %v813_v34 = vld [vmem:[%s1502_s0 + $0x2] ss:$16 sm:%s518_s5]   ;;  %v617_v35 = vsel %vm70_vm1, %v833_v26, %v612_v28  ;;  %v837_v37 = vld [vmem:[%s1502_s0 + $0x9] ss:$16 sm:%s636_s9]   ;;  %s654_s24 = smov 12  ;;  %s659_s2 = smov 48 }
  0x3a   :  { %509 = vrot.lane.b32.xlu1 %v508_v10, %s861_s8  ;;  %v521_v38 = vsel %vm65_vm0, %v813_v34, %v812_v33  ;;  %v814_v39 = vld [vmem:[%s1502_s0 + $0x2] ss:$16 sm:%s523_s10]   ;;  %v622_v45 = vsel %vm75_vm2, %v834_v32, %v617_v35  ;;  %v639_v46 = vsel %vm70_vm1, %v837_v37, %v634_v36  ;;  %s664_s6 = smov 192  ;;  %v2_v4 = vld [vmem:[%s1502_s0] ss:$8 sm:$0xf]  }
  0x3b   :  { %v838_v40 = vld [vmem:[%s1502_s0 + $0x9] ss:$16 sm:%s641_s15]   ;;  %v526_v41 = vsel %vm70_vm1, %v814_v39, %v521_v38  ;;  %v815_v42 = vld [vmem:[%s1502_s0 + $0x2] ss:$16 sm:%s528_s18]   ;;  %s863_s18 = smov 16  }
  0x3c   :  { %v846_v44 = vld [vmem:[%s1502_s0 + $0x89] ss:$16 sm:%s677_s19]   ;;  %v826_v47 = vld [vmem:[%s1502_s0 + $0x8a] ss:$16 sm:%s583_s4]   ;;  %v531_v49 = vsel %vm75_vm2, %v815_v42, %v526_v41  ;;  %v644_v52 = vsel %vm75_vm2, %v838_v40, %v639_v46 }
  0x3d   :  { %v827_v48 = vld [vmem:[%s1502_s0 + $0x8a] ss:$16 sm:%s586_s26]   ;;  %v847_v51 = vld [vmem:[%s1502_s0 + $0x89] ss:$16 sm:%s682_s23]  }
  0x3e   :  { %554 = vrot.lane.b32.xlu0 %v553_v23, %s862_s11  ;;  %463 = vrot.lane.b32.xlu2 %v462_v27, %s861_s8  ;;  %s674_s8 = smov 3  ;;  %v589_v53 = vsel %vm65_vm0, %v827_v48, %v826_v47  ;;  %v828_v54 = vld [vmem:[%s1502_s0 + $0x8a] ss:$16 sm:%s591_s14]  }
  0x3f   :  { %v845_v43 = vld [vmem:[%s1502_s0 + $0x89] ss:$16 sm:%s674_s8]   ;;  %v594_v57 = vsel %vm70_vm1, %v828_v54, %v589_v53  ;;  %v829_v58 = vld [vmem:[%s1502_s0 + $0x8a] ss:$16 sm:%s596_s20]  }
  0x40   :  { %v680_v50 = vsel %vm65_vm0, %v846_v44, %v845_v43  ;;  %v848_v56 = vld [vmem:[%s1502_s0 + $0x89] ss:$16 sm:%s687_s17]   ;;  %v840_v60 = vld [vmem:[%s1502_s0 + $0x81] ss:$16 sm:%s651_s29]   ;;  %v599_v62 = vsel %vm75_vm2, %v829_v58, %v594_v57 }
  0x41   :  { %v685_v55 = vsel %vm70_vm1, %v847_v51, %v680_v50  ;;  %v841_v61 = vld [vmem:[%s1502_s0 + $0x81] ss:$16 sm:%s654_s24]   ;;  %v3_v5 = vld [vmem:[%s1502_s0] ss:$8 sm:$0xf0]  }
  0x42   :  { %577 = vrot.lane.b32.xlu1 %v576_v31, %s862_s11  ;;  %v690_v59 = vsel %vm75_vm2, %v848_v56, %v685_v55  ;;  %v657_v63 = vsel %vm65_vm0, %v841_v61, %v840_v60  ;;  %v842_v0 = vld [vmem:[%s1502_s0 + $0x81] ss:$16 sm:%s659_s2]   ;;  %v5_v6 = vsel %vm4_vm3, %v3_v5, %v2_v4  ;;  %v699_v7 = vld [vmem:[%s1502_s0 + $0x40] ss:$8 sm:$0xf]  }
  0x43   :  { %v662_v1 = vsel %vm70_vm1, %v842_v0, %v657_v63  ;;  %v843_v2 = vld [vmem:[%s1502_s0 + $0x81] ss:$16 sm:%s664_s6]   ;;  %7 = vst.msk [vmem:[%s1503_s1] ss:$8 sm:$0x3] %vm6_vm4, %v5_v6  }
  0x44   :  { %v667_v3 = vsel %vm75_vm2, %v843_v2, %v662_v1  ;;  %v700_v8 = vld [vmem:[%s1502_s0 + $0x40] ss:$8 sm:$0xf0]   ;;  %696 = vst.msk [vmem:[%s1503_s1 - $0xf] ss:$8 sm:$0xc] %vm6_vm4, %v5_v6  }
  0x45   :  { %v19_v9 = vsel %vm4_vm3, %v700_v8, %v699_v7  ;;  %697 = vst.msk [vmem:[%s1503_s1 - $0x1e] ss:$8 sm:$0x30] %vm6_vm4, %v5_v6   ;;  %v705_v10 = vld [vmem:[%s1502_s0 + $0x80] ss:$8 sm:$0xf]  }
  0x46   :  { %623 = vrot.lane.b32.xlu0 %v622_v45, %s863_s18  ;;  %532 = vrot.lane.b32.xlu2 %v531_v49, %s862_s11  ;;  %698 = vst.msk [vmem:[%s1503_s1 - $0x2d] ss:$8 sm:$0xc0] %vm6_vm4, %v5_v6   ;;  %v706_v11 = vld [vmem:[%s1502_s0 + $0x80] ss:$8 sm:$0xf0]  }
  0x47   :  { %701 = vst.msk [vmem:[%s1503_s1 + $0x4] ss:$8 sm:$0x3] %vm6_vm4, %v19_v9   ;;  %v34_v12 = vsel %vm4_vm3, %v706_v11, %v705_v10  ;;  %v711_v13 = vld [vmem:[%s1502_s0 + $0xc0] ss:$8 sm:$0xf]  }
  0x48   :  { %702 = vst.msk [vmem:[%s1503_s1 - $0xb] ss:$8 sm:$0xc] %vm6_vm4, %v19_v9   ;;  %v712_v14 = vld [vmem:[%s1502_s0 + $0xc0] ss:$8 sm:$0xf0]  }
  0x49   :  { %703 = vst.msk [vmem:[%s1503_s1 - $0x1a] ss:$8 sm:$0x30] %vm6_vm4, %v19_v9   ;;  %v49_v15 = vsel %vm4_vm3, %v712_v14, %v711_v13 }
  0x4a   :  { %645 = vrot.lane.b32.xlu1 %v644_v52, %s863_s18  ;;  %704 = vst.msk [vmem:[%s1503_s1 - $0x29] ss:$8 sm:$0xc0] %vm6_vm4, %v19_v9  }
  0x4b   :  { %707 = vst.msk [vmem:[%s1503_s1 + $0x10] ss:$8 sm:$0x3] %vm6_vm4, %v34_v12  }
  0x4c   :  { %708 = vst.msk [vmem:[%s1503_s1 + $0x1] ss:$8 sm:$0xc] %vm6_vm4, %v34_v12  }
  0x4d   :  { %709 = vst.msk [vmem:[%s1503_s1 - $0xe] ss:$8 sm:$0x30] %vm6_vm4, %v34_v12  }
  0x4e   :  { %691 = vrot.lane.b32.xlu0 %v690_v59, %s863_s18  ;;  %600 = vrot.lane.b32.xlu2 %v599_v62, %s862_s11  ;;  %710 = vst.msk [vmem:[%s1503_s1 - $0x1d] ss:$8 sm:$0xc0] %vm6_vm4, %v34_v12  }
  0x4f   :  { %713 = vst.msk [vmem:[%s1503_s1 + $0x14] ss:$8 sm:$0x3] %vm6_vm4, %v49_v15  }
  0x50   :  { %714 = vst.msk [vmem:[%s1503_s1 + $0x5] ss:$8 sm:$0xc] %vm6_vm4, %v49_v15  }
  0x51   :  { %715 = vst.msk [vmem:[%s1503_s1 - $0xa] ss:$8 sm:$0x30] %vm6_vm4, %v49_v15  }
  0x52   :  { %716 = vst.msk [vmem:[%s1503_s1 - $0x19] ss:$8 sm:$0xc0] %vm6_vm4, %v49_v15  }
  0x56   :  { %668 = vrot.lane.b32.xlu2 %v667_v3, %s863_s18 }
  0x70   :  { %v169_v16 = vpop.permute.xlu2 %168  }
  0x78   :  { %v78_v17 = vpop.permute.xlu0 %77   ;;  %v191_v18 = vpop.permute.xlu2 %190  }
  0x79   :  { %80 = vst.msk [vmem:[%s1503_s1] sm:$0xff] %vm79_vm5, %v78_v17  }
  0x7a   :  { %171 = vst.msk [vmem:[%s1503_s1] sm:$0xff] %vm170_vm6, %v169_v16  }
  0x7c   :  { %v123_v19 = vpop.permute.xlu1 %122  }
  0x7d   :  { %730 = vst.msk [vmem:[%s1503_s1 + $0x10] sm:$0xff] %vm79_vm5, %v123_v19  }
  0x80   :  { %v100_v20 = vpop.permute.xlu0 %99   ;;  %v260_v21 = vpop.permute.xlu2 %259  }
  0x81   :  { %725 = vst.msk [vmem:[%s1503_s1 + $0x8] sm:$0xff] %vm79_vm5, %v100_v20  }
  0x82   :  { %744 = vst.msk [vmem:[%s1503_s1 + $0x8] sm:$0xff] %vm170_vm6, %v191_v18  }
  0x83   :  { %262 = vst.msk [vmem:[%s1503_s1] sm:$0xff] %vm261_vm7, %v260_v21  }
  0x84   :  { %v146_v22 = vpop.permute.xlu1 %145  }
  0x85   :  { %735 = vst.msk [vmem:[%s1503_s1 + $0x18] sm:$0xff] %vm79_vm5, %v146_v22  }
  0x88   :  { %v214_v23 = vpop.permute.xlu0 %213   ;;  %v328_v24 = vpop.permute.xlu2 %327  }
  0x89   :  { %749 = vst.msk [vmem:[%s1503_s1 + $0x10] sm:$0xff] %vm170_vm6, %v214_v23  }
  0x8c   :  { %v237_v25 = vpop.permute.xlu1 %236  }
  0x8d   :  { %754 = vst.msk [vmem:[%s1503_s1 + $0x18] sm:$0xff] %vm170_vm6, %v237_v25  }
  0x8e   :  { %773 = vst.msk [vmem:[%s1503_s1 + $0x18] sm:$0xff] %vm261_vm7, %v328_v24  }
  0x90   :  { %v282_v26 = vpop.permute.xlu0 %281   ;;  %v396_v27 = vpop.permute.xlu2 %395  }
  0x91   :  { %763 = vst.msk [vmem:[%s1503_s1 + $0x8] sm:$0xff] %vm261_vm7, %v282_v26  }
  0x94   :  { %v305_v28 = vpop.permute.xlu1 %304  }
  0x95   :  { %768 = vst.msk [vmem:[%s1503_s1 + $0x10] sm:$0xff] %vm261_vm7, %v305_v28  }
  0x96   :  { %787 = vst.msk [vmem:[%s1503_s1 + $0x10] sm:$0xff] %vm352_vm8, %v396_v27  }
  0x98   :  { %v351_v29 = vpop.permute.xlu0 %350   ;;  %v464_v30 = vpop.permute.xlu2 %463  }
  0x99   :  { %353 = vst.msk [vmem:[%s1503_s1] sm:$0xff] %vm352_vm8, %v351_v29  }
  0x9c   :  { %v373_v31 = vpop.permute.xlu1 %372  }
  0x9d   :  { %782 = vst.msk [vmem:[%s1503_s1 + $0x8] sm:$0xff] %vm352_vm8, %v373_v31  }
  0x9e   :  { %801 = vst.msk [vmem:[%s1503_s1 + $0x8] sm:$0xff] %vm443_vm9, %v464_v30  }
  0xa0   :  { %v419_v32 = vpop.permute.xlu0 %418   ;;  %v533_v33 = vpop.permute.xlu2 %532  }
  0xa1   :  { %792 = vst.msk [vmem:[%s1503_s1 + $0x18] sm:$0xff] %vm352_vm8, %v419_v32  }
  0xa4   :  { %v442_v34 = vpop.permute.xlu1 %441  }
  0xa5   :  { %444 = vst.msk [vmem:[%s1503_s1] sm:$0xff] %vm443_vm9, %v442_v34  }
  0xa6   :  { %535 = vst.msk [vmem:[%s1503_s1] sm:$0xff] %vm534_vm10, %v533_v33  }
  0xa8   :  { %v487_v35 = vpop.permute.xlu0 %486   ;;  %v601_v36 = vpop.permute.xlu2 %600  }
  0xa9   :  { %806 = vst.msk [vmem:[%s1503_s1 + $0x10] sm:$0xff] %vm443_vm9, %v487_v35  }
  0xac   :  { %v510_v37 = vpop.permute.xlu1 %509  }
  0xad   :  { %811 = vst.msk [vmem:[%s1503_s1 + $0x18] sm:$0xff] %vm443_vm9, %v510_v37  }
  0xae   :  { %830 = vst.msk [vmem:[%s1503_s1 + $0x18] sm:$0xff] %vm534_vm10, %v601_v36  }
  0xb0   :  { %v555_v38 = vpop.permute.xlu0 %554   ;;  %v669_v39 = vpop.permute.xlu2 %668  }
  0xb1   :  { %820 = vst.msk [vmem:[%s1503_s1 + $0x8] sm:$0xff] %vm534_vm10, %v555_v38  }
  0xb4   :  { %v578_v40 = vpop.permute.xlu1 %577  }
  0xb5   :  { %825 = vst.msk [vmem:[%s1503_s1 + $0x10] sm:$0xff] %vm534_vm10, %v578_v40  }
  0xb6   :  { %844 = vst.msk [vmem:[%s1503_s1 + $0x10] sm:$0xff] %vm625_vm11, %v669_v39  }
  0xb8   :  { %v624_v41 = vpop.permute.xlu0 %623  }
  0xb9   :  { %626 = vst.msk [vmem:[%s1503_s1] sm:$0xff] %vm625_vm11, %v624_v41  }
  0xbc   :  { %v646_v42 = vpop.permute.xlu1 %645  }
  0xbd   :  { %839 = vst.msk [vmem:[%s1503_s1 + $0x8] sm:$0xff] %vm625_vm11, %v646_v42  }
  0xc0   :  { %v692_v43 = vpop.permute.xlu0 %691  }
  0xc1   :  { %849 = vst.msk [vmem:[%s1503_s1 + $0x18] sm:$0xff] %vm625_vm11, %v692_v43  }

// kernel: tile.19
= control target key start
LH: loop header
LB: loop body
LE: loop exit
PB: predicated region body
PF: predicated region fallthrough
CT: control target
= control target key end

     0   :  { %vm6_vm0 = vcmask 1043458   ;;  %vm10_vm1 = vcmask 1045508   ;;  %vm14_vm2 = vcmask 1047558   ;;  %s19_s6 = smov 3  ;;  %s22_s7 = smov 12  ;;  %vm16_vm3 = vcmask 64512   ;;  %s736_s0 = inlined_call_operand.vmem [shape: f32[8,16,8], index: 0, kind: input, shape index: {}]   ;;  %s737_s1 = inlined_call_operand.vmem [shape: f32[8,128], index: 1, kind: output, shape index: {}]  }
   0x1   :  { %v348_v0 = vld [vmem:[%s736_s0 + $0xf] ss:$16 sm:%s19_s6]   ;;  %s27_s12 = smov 48  ;;  %s32_s13 = smov 192  ;;  %vm38_vm4 = vcmask 1048512   ;;  %vm60_vm5 = vcmask 982912  }
   0x2   :  { %v349_v1 = vld [vmem:[%s736_s0 + $0xf] ss:$16 sm:%s22_s7]   ;;  %s63_s18 = smov 3  ;;  %s66_s21 = smov 12  ;;  %vm82_vm6 = vcmask 917312   ;;  %vm104_vm7 = vcmask 851712  }
   0x3   :  { %v25_v2 = vsel %vm6_vm0, %v349_v1, %v348_v0  ;;  %v350_v3 = vld [vmem:[%s736_s0 + $0xf] ss:$16 sm:%s27_s12]   ;;  %v356_v6 = vld [vmem:[%s736_s0 + $0xd] ss:$16 sm:%s63_s18]   ;;  %s71_s22 = smov 48  ;;  %s76_s27 = smov 192 }
   0x4   :  { %v351_v4 = vld [vmem:[%s736_s0 + $0xf] ss:$16 sm:%s32_s13]   ;;  %v30_v5 = vsel %vm10_vm1, %v350_v3, %v25_v2  ;;  %v357_v8 = vld [vmem:[%s736_s0 + $0xd] ss:$16 sm:%s66_s21]   ;;  %s423_s28 = smov 120   ;;  %s41_s2 = smov 3 }
   0x5   :  { %v35_v7 = vsel %vm14_vm2, %v351_v4, %v30_v5  ;;  %v358_v9 = vld [vmem:[%s736_s0 + $0xd] ss:$16 sm:%s71_s22]   ;;  %v69_v10 = vsel %vm6_vm0, %v357_v8, %v356_v6  ;;  %s44_s3 = smov 12  ;;  %v352_v13 = vld [vmem:[%s736_s0 + $0xe] ss:$16 sm:%s41_s2]   ;;  %s49_s8 = smov 48 }
   0x6   :  { %36 = vrot.lane.b32.xlu0 %v35_v7, %s423_s28  ;;  %v359_v11 = vld [vmem:[%s736_s0 + $0xd] ss:$16 sm:%s76_s27]   ;;  %v74_v12 = vsel %vm10_vm1, %v358_v9, %v69_v10  ;;  %s54_s9 = smov 192  ;;  %s85_s14 = smov 3  ;;  %vm126_vm8 = vcmask 786112   ;;  %vm148_vm9 = vcmask 720512  }
   0x7   :  { %v353_v14 = vld [vmem:[%s736_s0 + $0xe] ss:$16 sm:%s44_s3]   ;;  %v79_v15 = vsel %vm14_vm2, %v359_v11, %v74_v12  ;;  %s424_s15 = smov 104   ;;  %v360_v20 = vld [vmem:[%s736_s0 + $0xc] ss:$16 sm:%s85_s14]   ;;  %s88_s18 = smov 12 }
   0x8   :  { %v47_v16 = vsel %vm6_vm0, %v353_v14, %v352_v13  ;;  %v354_v17 = vld [vmem:[%s736_s0 + $0xe] ss:$16 sm:%s49_s8]   ;;  %80 = vrot.lane.b32.xlu1 %v79_v15, %s424_s15  ;;  %s93_s19 = smov 48  ;;  %s98_s24 = smov 192  ;;  %vm170_vm10 = vcmask 654912   ;;  %vm192_vm11 = vcmask 589312  }
   0x9   :  { %v355_v18 = vld [vmem:[%s736_s0 + $0xe] ss:$16 sm:%s54_s9]   ;;  %v52_v19 = vsel %vm10_vm1, %v354_v17, %v47_v16  ;;  %v361_v21 = vld [vmem:[%s736_s0 + $0xc] ss:$16 sm:%s88_s18]   ;;  %s151_s27 = smov 3  ;;  %s154_s28 = smov 12 }
   0xa   :  { %v362_v22 = vld [vmem:[%s736_s0 + $0xc] ss:$16 sm:%s93_s19]   ;;  %v57_v23 = vsel %vm14_vm2, %v355_v18, %v52_v19  ;;  %v91_v24 = vsel %vm6_vm0, %v361_v21, %v360_v20  ;;  %v372_v27 = vld [vmem:[%s736_s0 + $0x9] ss:$16 sm:%s151_s27]   ;;  %s159_s4 = smov 48  ;;  %s164_s7 = smov 192 }
   0xb   :  { %v363_v25 = vld [vmem:[%s736_s0 + $0xc] ss:$16 sm:%s98_s24]   ;;  %v96_v26 = vsel %vm10_vm1, %v362_v22, %v91_v24  ;;  %v373_v28 = vld [vmem:[%s736_s0 + $0x9] ss:$16 sm:%s154_s28]   ;;  %s173_s8 = smov 3  ;;  %s425_s9 = smov 112  }
   0xc   :  { %v157_v29 = vsel %vm6_vm0, %v373_v28, %v372_v27  ;;  %v374_v30 = vld [vmem:[%s736_s0 + $0x9] ss:$16 sm:%s159_s4]   ;;  %v101_v31 = vsel %vm14_vm2, %v363_v25, %v96_v26  ;;  %v376_v32 = vld [vmem:[%s736_s0 + $0x8] ss:$16 sm:%s173_s8]   ;;  %s176_s12 = smov 12  ;;  %s181_s13 = smov 48 }
   0xd   :  { %v377_v33 = vld [vmem:[%s736_s0 + $0x8] ss:$16 sm:%s176_s12]   ;;  %s186_s16 = smov 192  ;;  %v162_v34 = vsel %vm10_vm1, %v374_v30, %v157_v29  ;;  %v375_v35 = vld [vmem:[%s736_s0 + $0x9] ss:$16 sm:%s164_s7]   ;;  %s217_s21 = smov 3 }
   0xe   :  { %58 = vrot.lane.b32.xlu0 %v57_v23, %s425_s9  ;;  %v179_v36 = vsel %vm6_vm0, %v377_v33, %v376_v32  ;;  %v378_v37 = vld [vmem:[%s736_s0 + $0x8] ss:$16 sm:%s181_s13]   ;;  %s220_s22 = smov 12  ;;  %s426_s23 = smov 96   ;;  %v167_v40 = vsel %vm14_vm2, %v375_v35, %v162_v34  ;;  %vm214_vm12 = vcmask 523712   ;;  %vm236_vm13 = vcmask 458112  }
   0xf   :  { %s225_s24 = smov 48  ;;  %v384_v38 = vld [vmem:[%s736_s0 + $0x6] ss:$16 sm:%s217_s21]   ;;  %s239_s29 = smov 3  ;;  %v184_v41 = vsel %vm10_vm1, %v378_v37, %v179_v36  ;;  %v379_v42 = vld [vmem:[%s736_s0 + $0x8] ss:$16 sm:%s186_s16]  }
  0x10   :  { %102 = vrot.lane.b32.xlu1 %v101_v31, %s426_s23  ;;  %v385_v39 = vld [vmem:[%s736_s0 + $0x6] ss:$16 sm:%s220_s22]   ;;  %s230_s3 = smov 192  ;;  %s242_s4 = smov 12  ;;  %v189_v47 = vsel %vm14_vm2, %v379_v42, %v184_v41  ;;  %vm258_vm14 = vcmask 392512   ;;  %vm280_vm15 = vcmask 326912  }
  0x11   :  { %v386_v43 = vld [vmem:[%s736_s0 + $0x6] ss:$16 sm:%s225_s24]   ;;  %s247_s7 = smov 48  ;;  %v223_v44 = vsel %vm6_vm0, %v385_v39, %v384_v38  ;;  %v388_v45 = vld [vmem:[%s736_s0 + $0x5] ss:$16 sm:%s239_s29]   ;;  %s107_s12 = smov 3 }
  0x12   :  { %v389_v46 = vld [vmem:[%s736_s0 + $0x5] ss:$16 sm:%s242_s4]   ;;  %s110_s13 = smov 12  ;;  %s427_s14 = smov 72   ;;  %v387_v48 = vld [vmem:[%s736_s0 + $0x6] ss:$16 sm:%s230_s3]   ;;  %v228_v52 = vsel %vm10_vm1, %v386_v43, %v223_v44 }
  0x13   :  { %v364_v49 = vld [vmem:[%s736_s0 + $0xb] ss:$16 sm:%s107_s12]   ;;  %s115_s19 = smov 48  ;;  %s120_s20 = smov 192  ;;  %v245_v53 = vsel %vm6_vm0, %v389_v46, %v388_v45  ;;  %v390_v54 = vld [vmem:[%s736_s0 + $0x5] ss:$16 sm:%s247_s7]   ;;  %v233_v61 = vsel %vm14_vm2, %v387_v48, %v228_v52 }
  0x14   :  { %s252_s21 = smov 192  ;;  %v365_v50 = vld [vmem:[%s736_s0 + $0xb] ss:$16 sm:%s110_s13]   ;;  %s283_s26 = smov 3  ;;  %v250_v62 = vsel %vm10_vm1, %v390_v54, %v245_v53 }
  0x15   :  { %v366_v51 = vld [vmem:[%s736_s0 + $0xb] ss:$16 sm:%s115_s19]   ;;  %v113_v55 = vsel %vm6_vm0, %v365_v50, %v364_v49  ;;  %s286_s2 = smov 12  ;;  %s428_s3 = smov 64   ;;  %v396_v59 = vld [vmem:[%s736_s0 + $0x3] ss:$16 sm:%s283_s26]  }
  0x16   :  { %168 = vrot.lane.b32.xlu0 %v167_v40, %s427_s14  ;;  %v367_v56 = vld [vmem:[%s736_s0 + $0xb] ss:$16 sm:%s120_s20]   ;;  %v118_v57 = vsel %vm10_vm1, %v366_v51, %v113_v55  ;;  %s291_s4 = smov 48  ;;  %s305_s9 = smov 3 }
  0x17   :  { %v123_v58 = vsel %vm14_vm2, %v367_v56, %v118_v57  ;;  %v397_v60 = vld [vmem:[%s736_s0 + $0x3] ss:$16 sm:%s286_s2]   ;;  %s308_s10 = smov 12  ;;  %v391_v63 = vld [vmem:[%s736_s0 + $0x5] ss:$16 sm:%s252_s21]   ;;  %s429_s13 = smov 88  }
  0x18   :  { %190 = vrot.lane.b32.xlu1 %v189_v47, %s428_s3  ;;  %124 = vrot.lane.b32.xlu2 %v123_v58, %s429_s13  ;;  %s296_s14 = smov 192  ;;  %s313_s15 = smov 48  ;;  %v398_v0 = vld [vmem:[%s736_s0 + $0x3] ss:$16 sm:%s291_s4]   ;;  %v289_v2 = vsel %vm6_vm0, %v397_v60, %v396_v59  ;;  %v255_v5 = vsel %vm14_vm2, %v391_v63, %v250_v62 }
  0x19   :  { %v400_v1 = vld [vmem:[%s736_s0 + $0x2] ss:$16 sm:%s305_s9]   ;;  %s129_s20 = smov 3  ;;  %s132_s25 = smov 12  ;;  %v399_v6 = vld [vmem:[%s736_s0 + $0x3] ss:$16 sm:%s296_s14]   ;;  %v294_v12 = vsel %vm10_vm1, %v398_v0, %v289_v2 }
  0x1a   :  { %v401_v3 = vld [vmem:[%s736_s0 + $0x2] ss:$16 sm:%s308_s10]   ;;  %v368_v4 = vld [vmem:[%s736_s0 + $0xa] ss:$16 sm:%s129_s20]   ;;  %s137_s26 = smov 48  ;;  %s430_s27 = smov 48   ;;  %v299_v20 = vsel %vm14_vm2, %v399_v6, %v294_v12 }
  0x1b   :  { %v402_v7 = vld [vmem:[%s736_s0 + $0x2] ss:$16 sm:%s313_s15]   ;;  %s318_s3 = smov 192  ;;  %v369_v8 = vld [vmem:[%s736_s0 + $0xa] ss:$16 sm:%s132_s25]   ;;  %s142_s6 = smov 192  ;;  %v311_v13 = vsel %vm6_vm0, %v401_v3, %v400_v1 }
  0x1c   :  { %v135_v9 = vsel %vm6_vm0, %v369_v8, %v368_v4  ;;  %v370_v10 = vld [vmem:[%s736_s0 + $0xa] ss:$16 sm:%s137_s26]   ;;  %s195_s11 = smov 3  ;;  %s198_s12 = smov 12  ;;  %v316_v21 = vsel %vm10_vm1, %v402_v7, %v311_v13  ;;  %v403_v22 = vld [vmem:[%s736_s0 + $0x2] ss:$16 sm:%s318_s3]  }
  0x1d   :  { %v371_v11 = vld [vmem:[%s736_s0 + $0xa] ss:$16 sm:%s142_s6]   ;;  %v140_v14 = vsel %vm10_vm1, %v370_v10, %v135_v9  ;;  %v380_v15 = vld [vmem:[%s736_s0 + $0x7] ss:$16 sm:%s195_s11]   ;;  %s203_s17 = smov 48  ;;  %s431_s18 = smov 40   ;;  %v321_v25 = vsel %vm14_vm2, %v403_v22, %v316_v21 }
  0x1e   :  { %234 = vrot.lane.b32.xlu0 %v233_v61, %s430_s27  ;;  %v381_v16 = vld [vmem:[%s736_s0 + $0x7] ss:$16 sm:%s198_s12]   ;;  %v145_v17 = vsel %vm14_vm2, %v371_v11, %v140_v14  ;;  %s208_s21 = smov 192  ;;  %s432_s24 = smov 80  }
  0x1f   :  { %v201_v18 = vsel %vm6_vm0, %v381_v16, %v380_v15  ;;  %v382_v19 = vld [vmem:[%s736_s0 + $0x7] ss:$16 sm:%s203_s17]   ;;  %s261_s25 = smov 3  ;;  %s264_s26 = smov 12 }
  0x20   :  { %256 = vrot.lane.b32.xlu1 %v255_v5, %s431_s18  ;;  %146 = vrot.lane.b32.xlu2 %v145_v17, %s432_s24  ;;  %v206_v23 = vsel %vm10_vm1, %v382_v19, %v201_v18  ;;  %v383_v24 = vld [vmem:[%s736_s0 + $0x7] ss:$16 sm:%s208_s21]   ;;  %s433_s29 = smov 24   ;;  %s269_s5 = smov 48 }
  0x21   :  { %v392_v26 = vld [vmem:[%s736_s0 + $0x4] ss:$16 sm:%s261_s25]   ;;  %v211_v28 = vsel %vm14_vm2, %v383_v24, %v206_v23  ;;  %s434_s6 = smov 16   ;;  %s274_s9 = smov 192 }
  0x22   :  { %v393_v27 = vld [vmem:[%s736_s0 + $0x4] ss:$16 sm:%s264_s26]   ;;  %s435_s10 = smov 56   ;;  %s327_s11 = smov 3 }
  0x23   :  { %v267_v29 = vsel %vm6_vm0, %v393_v27, %v392_v26  ;;  %v394_v30 = vld [vmem:[%s736_s0 + $0x4] ss:$16 sm:%s269_s5]   ;;  %s330_s12 = smov 12  ;;  %v404_v33 = vld [vmem:[%s736_s0 + $0x1] ss:$16 sm:%s327_s11]   ;;  %s335_s19 = smov 48 }
  0x24   :  { %v272_v31 = vsel %vm10_vm1, %v394_v30, %v267_v29  ;;  %v395_v32 = vld [vmem:[%s736_s0 + $0x4] ss:$16 sm:%s274_s9]   ;;  %v405_v34 = vld [vmem:[%s736_s0 + $0x1] ss:$16 sm:%s330_s12]   ;;  %s340_s22 = smov 192  ;;  %s436_s23 = smov 32  }
  0x25   :  { %v277_v35 = vsel %vm14_vm2, %v395_v32, %v272_v31  ;;  %v333_v36 = vsel %vm6_vm0, %v405_v34, %v404_v33  ;;  %v406_v37 = vld [vmem:[%s736_s0 + $0x1] ss:$16 sm:%s335_s19]   ;;  %s437_s26 = smov 8   ;;  %s2_s27 = smov 3 }
  0x26   :  { %300 = vrot.lane.b32.xlu0 %v299_v20, %s433_s29  ;;  %v338_v38 = vsel %vm10_vm1, %v406_v37, %v333_v36  ;;  %v407_v39 = vld [vmem:[%s736_s0 + $0x1] ss:$16 sm:%s340_s22]   ;;  %s4_s28 = smov 12  ;;  %s8_s29 = smov 48 }
  0x27   :  { %v343_v40 = vsel %vm14_vm2, %v407_v39, %v338_v38  ;;  %s12_s30 = smov 192  ;;  %v3_v41 = vld [vmem:[%s736_s0] ss:$16 sm:%s2_s27]  }
  0x28   :  { %322 = vrot.lane.b32.xlu1 %v321_v25, %s434_s6  ;;  %212 = vrot.lane.b32.xlu2 %v211_v28, %s435_s10  ;;  %v5_v42 = vld [vmem:[%s736_s0] ss:$16 sm:%s4_s28]  }
  0x29   :  { %v7_v43 = vsel %vm6_vm0, %v5_v42, %v3_v41  ;;  %v9_v44 = vld [vmem:[%s736_s0] ss:$16 sm:%s8_s29]   ;;  %vm302_vm0 = vcmask 261312  }
  0x2a   :  { %v11_v45 = vsel %vm10_vm1, %v9_v44, %v7_v43  ;;  %v13_v46 = vld [vmem:[%s736_s0] ss:$16 sm:%s12_s30]   ;;  %vm324_vm1 = vcmask 195712  }
  0x2b   :  { %v15_v47 = vsel %vm14_vm2, %v13_v46, %v11_v45  ;;  %vm346_vm2 = vcmask 130112  }
  0x2c   :  { %17 = vst.msk [vmem:[%s737_s1] sm:$0xff] %vm16_vm3, %v15_v47  }
  0x30   :  { %278 = vrot.lane.b32.xlu2 %v277_v35, %s436_s23 }
  0x38   :  { %344 = vrot.lane.b32.xlu2 %v343_v40, %s437_s26 }
  0x72   :  { %v125_v48 = vpop.permute.xlu2 %124  }
  0x78   :  { %v37_v49 = vpop.permute.xlu0 %36  }
  0x79   :  { %39 = vst.msk [vmem:[%s737_s1] sm:$0xff] %vm38_vm4, %v37_v49  }
  0x7a   :  { %v81_v50 = vpop.permute.xlu1 %80   ;;  %v147_v51 = vpop.permute.xlu2 %146  }
  0x80   :  { %v59_v52 = vpop.permute.xlu0 %58  }
  0x81   :  { %61 = vst.msk [vmem:[%s737_s1] sm:$0xff] %vm60_vm5, %v59_v52  }
  0x82   :  { %83 = vst.msk [vmem:[%s737_s1] sm:$0xff] %vm82_vm6, %v81_v50   ;;  %v103_v53 = vpop.permute.xlu1 %102   ;;  %v213_v54 = vpop.permute.xlu2 %212  }
  0x83   :  { %105 = vst.msk [vmem:[%s737_s1] sm:$0xff] %vm104_vm7, %v103_v53  }
  0x84   :  { %127 = vst.msk [vmem:[%s737_s1] sm:$0xff] %vm126_vm8, %v125_v48  }
  0x85   :  { %149 = vst.msk [vmem:[%s737_s1] sm:$0xff] %vm148_vm9, %v147_v51  }
  0x88   :  { %v169_v55 = vpop.permute.xlu0 %168  }
  0x89   :  { %171 = vst.msk [vmem:[%s737_s1] sm:$0xff] %vm170_vm10, %v169_v55  }
  0x8a   :  { %v191_v56 = vpop.permute.xlu1 %190   ;;  %v279_v57 = vpop.permute.xlu2 %278  }
  0x8b   :  { %193 = vst.msk [vmem:[%s737_s1] sm:$0xff] %vm192_vm11, %v191_v56  }
  0x8c   :  { %215 = vst.msk [vmem:[%s737_s1] sm:$0xff] %vm214_vm12, %v213_v54  }
  0x90   :  { %v235_v58 = vpop.permute.xlu0 %234  }
  0x91   :  { %237 = vst.msk [vmem:[%s737_s1] sm:$0xff] %vm236_vm13, %v235_v58  }
  0x92   :  { %v257_v59 = vpop.permute.xlu1 %256   ;;  %v345_v60 = vpop.permute.xlu2 %344  }
  0x93   :  { %259 = vst.msk [vmem:[%s737_s1] sm:$0xff] %vm258_vm14, %v257_v59  }
  0x94   :  { %281 = vst.msk [vmem:[%s737_s1] sm:$0xff] %vm280_vm15, %v279_v57  }
  0x98   :  { %v301_v61 = vpop.permute.xlu0 %300  }
  0x99   :  { %303 = vst.msk [vmem:[%s737_s1] sm:$0xff] %vm302_vm0, %v301_v61  }
  0x9a   :  { %v323_v62 = vpop.permute.xlu1 %322  }
  0x9b   :  { %325 = vst.msk [vmem:[%s737_s1] sm:$0xff] %vm324_vm1, %v323_v62  }
  0x9c   :  { %347 = vst.msk [vmem:[%s737_s1] sm:$0xff] %vm346_vm2, %v345_v60  }

// kernel: upa_lite_block_forward.1
= control target key start
LH: loop header
LB: loop body
LE: loop exit
PB: predicated region body
PF: predicated region fallthrough
CT: control target
= control target key end

     0   :  { %vm56_vm0 = vcmask 261120   ;;  %vm172_vm1 = vcmask 523264   ;;  %vm503_vm2 = vcmask 130048   ;;  %vm1191_vm6 = vcmask 64512   ;;  %s2468_s0 = inlined_call_operand.vmem [shape: f32[32,64], index: 0, kind: input, shape index: {}]   ;;  %s2469_s1 = inlined_call_operand.vmem [shape: f32[32,32], index: 1, kind: input, shape index: {}]   ;;  %s2470_s2 = inlined_call_operand.vmem [shape: f32[32,32], index: 2, kind: input, shape index: {}]   ;;  %s2471_s3 = inlined_call_operand.vmem [shape: f32[3,64,256], index: 3, kind: input, shape index: {}]   ;;  %s2472_s6 = inlined_call_operand.vmem [shape: f32[256,16], index: 6, kind: input, shape index: {}]   ;;  %s2473_s7 = inlined_call_operand.vmem [shape: f32[16,256], index: 7, kind: input, shape index: {}]   ;;  %s2474_s5 = inlined_call_operand.vmem [shape: f32[1,16], index: 5, kind: input, shape index: {}]   ;;  %s2475_s4 = inlined_call_operand.vmem [shape: f32[1,16], index: 4, kind: input, shape index: {}]   ;;  %s2476_s8 = inlined_call_operand.vmem [shape: f32[3,256,128], index: 8, kind: input, shape index: {}]   ;;  %s2477_s11 = inlined_call_operand.vmem [shape: f32[128,8], index: 11, kind: input, shape index: {}]   ;;  %s2478_s12 = inlined_call_operand.vmem [shape: f32[8,128], index: 12, kind: input, shape index: {}]   ;;  %s2479_s10 = inlined_call_operand.vmem [shape: f32[1,8], index: 10, kind: input, shape index: {}]   ;;  %s2480_s9 = inlined_call_operand.vmem [shape: f32[1,8], index: 9, kind: input, shape index: {}]   ;;  %s2481_s13 = inlined_call_operand.vmem [shape: f32[32,128], index: 13, kind: output, shape index: {}]  }
   0x1   :  { %v1574_v0 = vld [vmem:[%s2468_s0 + $0x18] sm:$0xff]  ;;  %v1579_v1 = vld [vmem:[%s2468_s0 + $0x10] sm:$0xff]  ;;  %v1586_v2 = vld [vmem:[%s2468_s0 + $0x8] sm:$0xff] }
   0x2   :  { %81 = vmatpush.msra.mxu0 %v1574_v0  ;;  %122 = vmatpush.msra.mxu1 %v1574_v0  ;;  %v1595_v3 = vld [vmem:[%s2468_s0] sm:$0xff]  ;;  %v1618_v6 = vld [vmem:[%s2469_s1 + $0x10] sm:$0xff]  ;;  %v1359_v9 = vld [vmem:[%s2471_s3 + $0xf8] sm:$0xff] }
   0x3   :  { %1489 = vmatpush.msra.mxu2 %v1574_v0  ;;  %1493 = vmatpush.msra.mxu3 %v1574_v0  ;;  %v1604_v4 = vld [vmem:[%s2469_s1] sm:$0xff]  ;;  %v1623_v7 = vld [vmem:[%s2470_s2 + $0x10] sm:$0xff]  ;;  %v1357_v11 = vld [vmem:[%s2471_s3 + $0xe8] sm:$0xff] }
   0x4   :  { %82 = vmatpush.msra.mxu0 %v1579_v1  ;;  %123 = vmatpush.msra.mxu1 %v1579_v1  ;;  %v1609_v5 = vld [vmem:[%s2470_s2] sm:$0xff]  ;;  %v1358_v8 = vld [vmem:[%s2471_s3 + $0xf0] sm:$0xff]  ;;  %v1355_v13 = vld [vmem:[%s2471_s3 + $0xd8] sm:$0xff] }
   0x5   :  { %1490 = vmatpush.msra.mxu2 %v1579_v1  ;;  %1494 = vmatpush.msra.mxu3 %v1579_v1  ;;  %v1356_v10 = vld [vmem:[%s2471_s3 + $0xe0] sm:$0xff]  ;;  %v1354_v12 = vld [vmem:[%s2471_s3 + $0xd0] sm:$0xff]  ;;  %v154_v15 = vld [vmem:[%s2471_s3 + $0x78] sm:$0xff] }
   0x6   :  { %83 = vmatpush.msra.mxu0 %v1586_v2  ;;  %124 = vmatpush.msra.mxu1 %v1586_v2  ;;  %v153_v14 = vld [vmem:[%s2471_s3 + $0x70] sm:$0xff]  ;;  %v1662_v16 = vld [vmem:[%s2469_s1 + $0x8] sm:$0xff]  ;;  %v1352_v18 = vld [vmem:[%s2471_s3 + $0xc0] sm:$0xff] }
   0x7   :  { %1491 = vmatpush.msra.mxu2 %v1586_v2  ;;  %1495 = vmatpush.msra.mxu3 %v1586_v2  ;;  %v1667_v17 = vld [vmem:[%s2470_s2 + $0x8] sm:$0xff]  ;;  %v1678_v20 = vld [vmem:[%s2469_s1 + $0x18] sm:$0xff]  ;;  %v1350_v22 = vld [vmem:[%s2471_s3 + $0xb0] sm:$0xff] }
   0x8   :  { %84 = vmatpush.msra.mxu0 %v1595_v3  ;;  %125 = vmatpush.msra.mxu1 %v1595_v3  ;;  %v1353_v19 = vld [vmem:[%s2471_s3 + $0xc8] sm:$0xff]  ;;  %v1683_v21 = vld [vmem:[%s2470_s2 + $0x18] sm:$0xff]  ;;  %v151_v24 = vld [vmem:[%s2471_s3 + $0x60] sm:$0xff] }
   0x9   :  { %1336 = vmatmul.msk.f32.vlgmr.msra.gmra.mxu0 %vm56_vm0, %v1604_v4  ;;  %1340 = vmatmul.msk.f32.vlgmr.msra.gmra.mxu1 %vm56_vm0, %v1609_v5  ;;  %v1351_v23 = vld [vmem:[%s2471_s3 + $0xb8] sm:$0xff]  ;;  %v152_v25 = vld [vmem:[%s2471_s3 + $0x68] sm:$0xff]  ;;  %v1348_v26 = vld [vmem:[%s2471_s3 + $0xa0] sm:$0xff] }
   0xa   :  { %1492 = vmatpush.msra.mxu2 %v1595_v3  ;;  %1496 = vmatpush.msra.mxu3 %v1595_v3  ;;  %v1349_v27 = vld [vmem:[%s2471_s3 + $0xa8] sm:$0xff]  ;;  %v149_v28 = vld [vmem:[%s2471_s3 + $0x50] sm:$0xff]  ;;  %v150_v29 = vld [vmem:[%s2471_s3 + $0x58] sm:$0xff] }
   0xb   :  { %1338 = vmatmul.msk.f32.vlgmr.msra.gmra.mxu2 %vm56_vm0, %v1618_v6  ;;  %1342 = vmatmul.msk.f32.vlgmr.msra.gmra.mxu3 %vm56_vm0, %v1623_v7  ;;  %v1346_v30 = vld [vmem:[%s2471_s3 + $0x90] sm:$0xff]  ;;  %v1347_v31 = vld [vmem:[%s2471_s3 + $0x98] sm:$0xff]  ;;  %v147_v32 = vld [vmem:[%s2471_s3 + $0x40] sm:$0xff] }
   0xc   :  { %193 = vmatpush.msrb.mxu2 %v1358_v8  ;;  %222 = vmatpush.msrb.mxu3 %v1359_v9  ;;  %v148_v33 = vld [vmem:[%s2471_s3 + $0x48] sm:$0xff]  ;;  %v1344_v34 = vld [vmem:[%s2471_s3 + $0x80] sm:$0xff]  ;;  %v1390_v36 = vld [vmem:[%s2471_s3 + $0x170] sm:$0xff] }
   0xd   :  { %263 = vmatpush.msrb.mxu0 %v153_v14  ;;  %292 = vmatpush.msrb.mxu1 %v154_v15  ;;  %v1345_v35 = vld [vmem:[%s2471_s3 + $0x88] sm:$0xff]  ;;  %v1391_v37 = vld [vmem:[%s2471_s3 + $0x178] sm:$0xff]  ;;  %v145_v38 = vld [vmem:[%s2471_s3 + $0x30] sm:$0xff] }
   0xe   :  { %194 = vmatpush.msrb.mxu2 %v1356_v10  ;;  %223 = vmatpush.msrb.mxu3 %v1357_v11  ;;  %v146_v39 = vld [vmem:[%s2471_s3 + $0x38] sm:$0xff]  ;;  %v1388_v40 = vld [vmem:[%s2471_s3 + $0x160] sm:$0xff]  ;;  %v1389_v41 = vld [vmem:[%s2471_s3 + $0x168] sm:$0xff] }
   0xf   :  { %264 = vmatpush.msrb.mxu0 %v151_v24  ;;  %293 = vmatpush.msrb.mxu1 %v152_v25  ;;  %v143_v42 = vld [vmem:[%s2471_s3 + $0x20] sm:$0xff]  ;;  %v144_v43 = vld [vmem:[%s2471_s3 + $0x28] sm:$0xff]  ;;  %v1386_v44 = vld [vmem:[%s2471_s3 + $0x150] sm:$0xff] }
  0x10   :  { %195 = vmatpush.msrb.mxu2 %v1354_v12  ;;  %224 = vmatpush.msrb.mxu3 %v1355_v13  ;;  %v1387_v45 = vld [vmem:[%s2471_s3 + $0x158] sm:$0xff]  ;;  %v141_v46 = vld [vmem:[%s2471_s3 + $0x10] sm:$0xff]  ;;  %v1384_v48 = vld [vmem:[%s2471_s3 + $0x140] sm:$0xff] }
  0x11   :  { %1337 = vmatmul.msk.f32.gmra.mxu0 %vm56_vm0, %v1662_v16  ;;  %1341 = vmatmul.msk.f32.gmra.mxu1 %vm56_vm0, %v1667_v17  ;;  %v142_v47 = vld [vmem:[%s2471_s3 + $0x18] sm:$0xff]  ;;  %v1385_v49 = vld [vmem:[%s2471_s3 + $0x148] sm:$0xff]  ;;  %v1382_v50 = vld [vmem:[%s2471_s3 + $0x130] sm:$0xff] }
  0x12   :  { %196 = vmatpush.msrb.mxu2 %v1352_v18  ;;  %225 = vmatpush.msrb.mxu3 %v1353_v19  ;;  %v1383_v51 = vld [vmem:[%s2471_s3 + $0x138] sm:$0xff]  ;;  %v1380_v52 = vld [vmem:[%s2471_s3 + $0x120] sm:$0xff]  ;;  %v1381_v53 = vld [vmem:[%s2471_s3 + $0x128] sm:$0xff] }
  0x13   :  { %1339 = vmatmul.msk.f32.gmra.mxu2 %vm56_vm0, %v1678_v20  ;;  %1343 = vmatmul.msk.f32.gmra.mxu3 %vm56_vm0, %v1683_v21  ;;  %v1378_v54 = vld [vmem:[%s2471_s3 + $0x110] sm:$0xff]  ;;  %v1379_v55 = vld [vmem:[%s2471_s3 + $0x118] sm:$0xff]  ;;  %v1376_v56 = vld [vmem:[%s2471_s3 + $0x100] sm:$0xff] }
  0x14   :  { %197 = vmatpush.msrb.mxu2 %v1350_v22  ;;  %226 = vmatpush.msrb.mxu3 %v1351_v23  ;;  %v1377_v57 = vld [vmem:[%s2471_s3 + $0x108] sm:$0xff]  ;;  %v139_v58 = vld [vmem:[%s2471_s3] sm:$0xff]  ;;  %v441_v12 = vld [vmem:[%s2472_s6 + $0x78] sm:$0xff] }
  0x15   :  { %265 = vmatpush.msrb.mxu0 %v149_v28  ;;  %294 = vmatpush.msrb.mxu1 %v150_v29  ;;  %v140_v59 = vld [vmem:[%s2471_s3 + $0x8] sm:$0xff]  ;;  %v457_v13 = vld [vmem:[%s2472_s6 + $0xf8] sm:$0xff]  ;;  %v440_v14 = vld [vmem:[%s2472_s6 + $0x70] sm:$0xff] }
  0x16   :  { %198 = vmatpush.msrb.mxu2 %v1348_v26  ;;  %227 = vmatpush.msrb.mxu3 %v1349_v27  ;;  %v456_v15 = vld [vmem:[%s2472_s6 + $0xf0] sm:$0xff]  ;;  %v439_v18 = vld [vmem:[%s2472_s6 + $0x68] sm:$0xff]  ;;  %v438_v24 = vld [vmem:[%s2472_s6 + $0x60] sm:$0xff] }
  0x17   :  { %266 = vmatpush.msrb.mxu0 %v147_v32  ;;  %295 = vmatpush.msrb.mxu1 %v148_v33  ;;  %v455_v23 = vld [vmem:[%s2472_s6 + $0xe8] sm:$0xff]  ;;  %v454_v25 = vld [vmem:[%s2472_s6 + $0xe0] sm:$0xff]  ;;  %v437_v26 = vld [vmem:[%s2472_s6 + $0x58] sm:$0xff] }
  0x18   :  { %199 = vmatpush.msrb.mxu2 %v1346_v30  ;;  %228 = vmatpush.msrb.mxu3 %v1347_v31  ;;  %v453_v27 = vld [vmem:[%s2472_s6 + $0xd8] sm:$0xff]  ;;  %v436_v28 = vld [vmem:[%s2472_s6 + $0x50] sm:$0xff]  ;;  %v435_v30 = vld [vmem:[%s2472_s6 + $0x48] sm:$0xff] }
  0x19   :  { %267 = vmatpush.msrb.mxu0 %v145_v38  ;;  %296 = vmatpush.msrb.mxu1 %v146_v39  ;;  %v452_v29 = vld [vmem:[%s2472_s6 + $0xd0] sm:$0xff]  ;;  %v451_v31 = vld [vmem:[%s2472_s6 + $0xc8] sm:$0xff]  ;;  %v433_v38 = vld [vmem:[%s2472_s6 + $0x38] sm:$0xff] }
  0x1a   :  { %200 = vmatpush.msrb.mxu2 %v1344_v34  ;;  %229 = vmatpush.msrb.mxu3 %v1345_v35  ;;  %v434_v34 = vld [vmem:[%s2472_s6 + $0x40] sm:$0xff]  ;;  %v449_v39 = vld [vmem:[%s2472_s6 + $0xb8] sm:$0xff] }
  0x1b   :  { %1360 = vmatmul.msk.f32.vlgmr.msrb.gmra.mxu2 %vm172_vm1, %v1595_v3  ;;  %1364 = vmatmul.msk.f32.vlgmr.msrb.gmra.mxu3 %vm172_vm1, %v1595_v3  ;;  %v450_v35 = vld [vmem:[%s2472_s6 + $0xc0] sm:$0xff] }
  0x1c   :  { %350 = vmatpush.msra.mxu2 %v1390_v36  ;;  %379 = vmatpush.msra.mxu3 %v1391_v37 }
  0x1d   :  { %268 = vmatpush.msrb.mxu0 %v143_v42  ;;  %297 = vmatpush.msrb.mxu1 %v144_v43  ;;  %v431_v42 = vld [vmem:[%s2472_s6 + $0x28] sm:$0xff] }
  0x1e   :  { %351 = vmatpush.msra.mxu2 %v1388_v40  ;;  %380 = vmatpush.msra.mxu3 %v1389_v41  ;;  %v432_v40 = vld [vmem:[%s2472_s6 + $0x30] sm:$0xff]  ;;  %v447_v43 = vld [vmem:[%s2472_s6 + $0xa8] sm:$0xff] }
  0x1f   :  { %269 = vmatpush.msrb.mxu0 %v141_v46  ;;  %298 = vmatpush.msrb.mxu1 %v142_v47  ;;  %v448_v41 = vld [vmem:[%s2472_s6 + $0xb0] sm:$0xff] }
  0x20   :  { %352 = vmatpush.msra.mxu2 %v1386_v44  ;;  %381 = vmatpush.msra.mxu3 %v1387_v45  ;;  %v430_v44 = vld [vmem:[%s2472_s6 + $0x20] sm:$0xff] }
  0x21   :  { %270 = vmatpush.msrb.mxu0 %v139_v58  ;;  %299 = vmatpush.msrb.mxu1 %v140_v59  ;;  %v446_v45 = vld [vmem:[%s2472_s6 + $0xa0] sm:$0xff] }
  0x22   :  { %353 = vmatpush.msra.mxu2 %v1384_v48  ;;  %382 = vmatpush.msra.mxu3 %v1385_v49 }
  0x23   :  { %1361 = vmatmul.msk.f32.gmra.mxu2 %vm172_vm1, %v1586_v2  ;;  %1365 = vmatmul.msk.f32.gmra.mxu3 %vm172_vm1, %v1586_v2 }
  0x24   :  { %354 = vmatpush.msra.mxu2 %v1382_v50  ;;  %383 = vmatpush.msra.mxu3 %v1383_v51  ;;  %v429_v50 = vld [vmem:[%s2472_s6 + $0x18] sm:$0xff] }
  0x25   :  { %458 = vmatpush.msra.mxu0 %v441_v12  ;;  %478 = vmatpush.msra.mxu1 %v457_v13  ;;  %v445_v51 = vld [vmem:[%s2472_s6 + $0x98] sm:$0xff] }
  0x26   :  { %355 = vmatpush.msra.mxu2 %v1380_v52  ;;  %384 = vmatpush.msra.mxu3 %v1381_v53  ;;  %v428_v52 = vld [vmem:[%s2472_s6 + $0x10] sm:$0xff] }
  0x27   :  { %459 = vmatpush.msra.mxu0 %v440_v14  ;;  %479 = vmatpush.msra.mxu1 %v456_v15  ;;  %v444_v53 = vld [vmem:[%s2472_s6 + $0x90] sm:$0xff] }
  0x28   :  { %356 = vmatpush.msra.mxu2 %v1378_v54  ;;  %385 = vmatpush.msra.mxu3 %v1379_v55  ;;  %v427_v54 = vld [vmem:[%s2472_s6 + $0x8] sm:$0xff] }
  0x29   :  { %460 = vmatpush.msra.mxu0 %v439_v18  ;;  %480 = vmatpush.msra.mxu1 %v455_v23  ;;  %v443_v55 = vld [vmem:[%s2472_s6 + $0x88] sm:$0xff] }
  0x2a   :  { %357 = vmatpush.msra.mxu2 %v1376_v56  ;;  %386 = vmatpush.msra.mxu3 %v1377_v57  ;;  %v426_v56 = vld [vmem:[%s2472_s6] sm:$0xff] }
  0x2b   :  { %1362 = vmatmul.msk.f32.gmra.mxu2 %vm172_vm1, %v1579_v1  ;;  %1366 = vmatmul.msk.f32.gmra.mxu3 %vm172_vm1, %v1579_v1  ;;  %v442_v57 = vld [vmem:[%s2472_s6 + $0x80] sm:$0xff] }
  0x2c   :  { %583 = vmatpush.msrb.mxu2 %v441_v12  ;;  %603 = vmatpush.msrb.mxu3 %v457_v13 }
  0x2d   :  { %461 = vmatpush.msra.mxu0 %v438_v24  ;;  %481 = vmatpush.msra.mxu1 %v454_v25 }
  0x2e   :  { %584 = vmatpush.msrb.mxu2 %v440_v14  ;;  %604 = vmatpush.msrb.mxu3 %v456_v15 }
  0x2f   :  { %462 = vmatpush.msra.mxu0 %v437_v26  ;;  %482 = vmatpush.msra.mxu1 %v453_v27 }
  0x30   :  { %585 = vmatpush.msrb.mxu2 %v439_v18  ;;  %605 = vmatpush.msrb.mxu3 %v455_v23 }
  0x31   :  { %463 = vmatpush.msra.mxu0 %v436_v28  ;;  %483 = vmatpush.msra.mxu1 %v452_v29 }
  0x32   :  { %586 = vmatpush.msrb.mxu2 %v438_v24  ;;  %606 = vmatpush.msrb.mxu3 %v454_v25 }
  0x33   :  { %1363 = vmatmul.msk.f32.gmra.mxu2 %vm172_vm1, %v1574_v0  ;;  %1367 = vmatmul.msk.f32.gmra.mxu3 %vm172_vm1, %v1574_v0 }
  0x34   :  { %587 = vmatpush.msrb.mxu2 %v437_v26  ;;  %607 = vmatpush.msrb.mxu3 %v453_v27 }
  0x35   :  { %464 = vmatpush.msra.mxu0 %v435_v30  ;;  %484 = vmatpush.msra.mxu1 %v451_v31 }
  0x36   :  { %588 = vmatpush.msrb.mxu2 %v436_v28  ;;  %608 = vmatpush.msrb.mxu3 %v452_v29 }
  0x37   :  { %465 = vmatpush.msra.mxu0 %v434_v34  ;;  %485 = vmatpush.msra.mxu1 %v450_v35 }
  0x38   :  { %589 = vmatpush.msrb.mxu2 %v435_v30  ;;  %609 = vmatpush.msrb.mxu3 %v451_v31 }
  0x39   :  { %466 = vmatpush.msra.mxu0 %v433_v38  ;;  %486 = vmatpush.msra.mxu1 %v449_v39 }
  0x3a   :  { %590 = vmatpush.msrb.mxu2 %v434_v34  ;;  %610 = vmatpush.msrb.mxu3 %v450_v35 }
  0x3b   :  { %467 = vmatpush.msra.mxu0 %v432_v40  ;;  %487 = vmatpush.msra.mxu1 %v448_v41 }
  0x3c   :  { %591 = vmatpush.msrb.mxu2 %v433_v38  ;;  %611 = vmatpush.msrb.mxu3 %v449_v39 }
  0x3d   :  { %468 = vmatpush.msra.mxu0 %v431_v42  ;;  %488 = vmatpush.msra.mxu1 %v447_v43 }
  0x3e   :  { %592 = vmatpush.msrb.mxu2 %v432_v40  ;;  %612 = vmatpush.msrb.mxu3 %v448_v41 }
  0x3f   :  { %469 = vmatpush.msra.mxu0 %v430_v44  ;;  %489 = vmatpush.msra.mxu1 %v446_v45 }
  0x40   :  { %593 = vmatpush.msrb.mxu2 %v431_v42  ;;  %613 = vmatpush.msrb.mxu3 %v447_v43 }
  0x41   :  { %470 = vmatpush.msra.mxu0 %v429_v50  ;;  %490 = vmatpush.msra.mxu1 %v445_v51 }
  0x42   :  { %594 = vmatpush.msrb.mxu2 %v430_v44  ;;  %614 = vmatpush.msrb.mxu3 %v446_v45 }
  0x43   :  { %471 = vmatpush.msra.mxu0 %v428_v52  ;;  %491 = vmatpush.msra.mxu1 %v444_v53 }
  0x44   :  { %595 = vmatpush.msrb.mxu2 %v429_v50  ;;  %615 = vmatpush.msrb.mxu3 %v445_v51 }
  0x45   :  { %472 = vmatpush.msra.mxu0 %v427_v54  ;;  %492 = vmatpush.msra.mxu1 %v443_v55 }
  0x46   :  { %596 = vmatpush.msrb.mxu2 %v428_v52  ;;  %616 = vmatpush.msrb.mxu3 %v444_v53 }
  0x47   :  { %473 = vmatpush.msra.mxu0 %v426_v56  ;;  %493 = vmatpush.msra.mxu1 %v442_v57 }
  0x48   :  { %597 = vmatpush.msrb.mxu2 %v427_v54  ;;  %617 = vmatpush.msrb.mxu3 %v443_v55 }
  0x4a   :  { %598 = vmatpush.msrb.mxu2 %v426_v56  ;;  %618 = vmatpush.msrb.mxu3 %v442_v57 }
  0x86   :  { %v86_v60 = vpop.f32.mrf.mxu0  ;;  %v127_v61 = vpop.f32.mrf.mxu1 }
  0x87   :  { %1368 = vmatmul.msk.f32.vlgmr.msrb.gmra.mxu0 %vm172_vm1, %v86_v60  ;;  %1372 = vmatmul.msk.f32.vlgmr.msrb.gmra.mxu1 %vm172_vm1, %v86_v60  ;;  %v501_v60 = vld [vmem:[%s2473_s7 + $0x10] sm:$0xff] }
  0x88   :  { %1392 = vmatmul.msk.f32.vlgmr.msra.gmra.mxu2 %vm172_vm1, %v127_v61  ;;  %1396 = vmatmul.msk.f32.vlgmr.msra.gmra.mxu3 %vm172_vm1, %v127_v61  ;;  %v502_v61 = vld [vmem:[%s2473_s7 + $0x18] sm:$0xff] }
  0x89   :  { %521 = vmatpush.msrb.mxu0 %v501_v60  ;;  %541 = vmatpush.msrb.mxu1 %v502_v61 }
  0x8a   :  { %708 = vmatpush.msra.mxu2 %v501_v60  ;;  %728 = vmatpush.msra.mxu3 %v502_v61 }
  0x8e   :  { %v89_v62 = vpop.f32.mrf.mxu0  ;;  %v130_v63 = vpop.f32.mrf.mxu1 }
  0x8f   :  { %1369 = vmatmul.msk.f32.gmra.mxu0 %vm172_vm1, %v89_v62  ;;  %1373 = vmatmul.msk.f32.gmra.mxu1 %vm172_vm1, %v89_v62  ;;  %v92_v0 = vpop.f32.mrf.mxu2  ;;  %v133_v1 = vpop.f32.mrf.mxu3 }
  0x90   :  { %1393 = vmatmul.msk.f32.gmra.mxu2 %vm172_vm1, %v130_v63  ;;  %1397 = vmatmul.msk.f32.gmra.mxu3 %vm172_vm1, %v130_v63 }
  0x97   :  { %1370 = vmatmul.msk.f32.gmra.mxu0 %vm172_vm1, %v92_v0  ;;  %1374 = vmatmul.msk.f32.gmra.mxu1 %vm172_vm1, %v92_v0  ;;  %v95_v2 = vpop.f32.mrf.mxu2  ;;  %v136_v3 = vpop.f32.mrf.mxu3 }
  0x98   :  { %1394 = vmatmul.msk.f32.gmra.mxu2 %vm172_vm1, %v133_v1  ;;  %1398 = vmatmul.msk.f32.gmra.mxu3 %vm172_vm1, %v133_v1 }
  0x9f   :  { %1371 = vmatmul.msk.f32.gmra.mxu0 %vm172_vm1, %v95_v2  ;;  %1375 = vmatmul.msk.f32.gmra.mxu1 %vm172_vm1, %v95_v2  ;;  %v1839_v8 = vpop.f32.mrf.mxu2  ;;  %v1841_v9 = vpop.f32.mrf.mxu3 }
  0xa0   :  { %1395 = vmatmul.msk.f32.gmra.mxu2 %vm172_vm1, %v136_v3  ;;  %1399 = vmatmul.msk.f32.gmra.mxu3 %vm172_vm1, %v136_v3 }
  0xa7   :  { %v1843_v10 = vpop.f32.mrf.mxu2  ;;  %v1845_v11 = vpop.f32.mrf.mxu3 }
  0xaf   :  { %v1862_v19 = vpop.f32.mrf.mxu2  ;;  %v1864_v22 = vpop.f32.mrf.mxu3 }
  0xb7   :  { %v1893_v32 = vpop.f32.mrf.mxu2  ;;  %v1895_v33 = vpop.f32.mrf.mxu3 }
 0x104   :  { %v1903_v36 = vpop.f32.mrf.mxu0  ;;  %v1905_v37 = vpop.f32.mrf.mxu1 }
 0x105   :  { %v273_v12 = vadd.f32 %v1903_v36, %v1839_v8  ;;  %v302_v13 = vadd.f32 %v1905_v37, %v1841_v9 }
 0x10b   :  { %v359_v46 = vpop.f32.mrf.mxu2  ;;  %v388_v47 = vpop.f32.mrf.mxu3 }
 0x10c   :  { %v275_v48 = vpop.f32.mrf.mxu0  ;;  %v304_v49 = vpop.f32.mrf.mxu1  ;;  %v400_v26 = vadd.f32 %v359_v46, %v273_v12  ;;  %v401_v27 = vadd.f32 %v388_v47, %v302_v13 }
 0x10d   :  { %v276_v2 = vadd.f32 %v275_v48, %v1843_v10  ;;  %v305_v3 = vadd.f32 %v304_v49, %v1845_v11  ;;  %v499_v48 = vld [vmem:[%s2473_s7] sm:$0xff]  ;;  %v500_v49 = vld [vmem:[%s2473_s7 + $0x8] sm:$0xff] }
 0x10e   :  { %522 = vmatpush.msrb.mxu0 %v499_v48  ;;  %542 = vmatpush.msrb.mxu1 %v500_v49 }
 0x10f   :  { %709 = vmatpush.msra.mxu2 %v499_v48  ;;  %729 = vmatpush.msra.mxu3 %v500_v49 }
 0x113   :  { %v362_v58 = vpop.f32.mrf.mxu2  ;;  %v391_v59 = vpop.f32.mrf.mxu3 }
 0x114   :  { %v278_v62 = vpop.f32.mrf.mxu0  ;;  %v307_v63 = vpop.f32.mrf.mxu1  ;;  %v402_v14 = vadd.f32 %v362_v58, %v276_v2  ;;  %v403_v15 = vadd.f32 %v391_v59, %v305_v3 }
 0x115   :  { %v279_v18 = vadd.f32 %v278_v62, %v1862_v19  ;;  %v308_v23 = vadd.f32 %v307_v63, %v1864_v22 }
 0x116   :  { %v408_v29 = vadd.f32 %v402_v14, %v400_v26  ;;  %v417_v11 = vadd.f32 %v403_v15, %v401_v27 }
 0x11b   :  { %v365_v0 = vpop.f32.mrf.mxu2  ;;  %v394_v1 = vpop.f32.mrf.mxu3 }
 0x11c   :  { %v281_v24 = vpop.f32.mrf.mxu0  ;;  %v310_v25 = vpop.f32.mrf.mxu1  ;;  %v404_v28 = vadd.f32 %v365_v0, %v279_v18  ;;  %v405_v10 = vadd.f32 %v394_v1, %v308_v23 }
 0x11d   :  { %v282_v30 = vadd.f32 %v281_v24, %v1893_v32  ;;  %v311_v8 = vadd.f32 %v310_v25, %v1895_v33 }
 0x11e   :  { %v409_v34 = vadd.f32 %v408_v29, %v404_v28  ;;  %v418_v35 = vadd.f32 %v417_v11, %v405_v10 }
 0x123   :  { %v368_v31 = vpop.f32.mrf.mxu2  ;;  %v397_v9 = vpop.f32.mrf.mxu3 }
 0x124   :  { %v406_v36 = vadd.f32 %v368_v31, %v282_v30  ;;  %v407_v19 = vadd.f32 %v397_v9, %v311_v8 }
 0x126   :  { %v410_v37 = vadd.f32 %v409_v34, %v406_v36  ;;  %v419_v22 = vadd.f32 %v418_v35, %v407_v19 }
 0x128   :  { %v411_v38 = vrot.slane %v410_v37, 4  ;;  %v420_v39 = vrot.slane %v419_v22, 4 }
 0x12a   :  { %v412_v40 = vadd.f32 %v411_v38, %v410_v37  ;;  %v421_v41 = vadd.f32 %v420_v39, %v419_v22  ;;  %v690_v38 = vld [vmem:[%s2474_s5] sm:$0x1] }
 0x12c   :  { %v413_v42 = vrot.slane %v412_v40, 2  ;;  %v422_v43 = vrot.slane %v421_v41, 2 }
 0x12e   :  { %v414_v44 = vadd.f32 %v413_v42, %v412_v40  ;;  %v423_v45 = vadd.f32 %v422_v43, %v421_v41 }
 0x130   :  { %v415_v46 = vrot.slane %v414_v44, 1  ;;  %v424_v32 = vrot.slane %v423_v45, 1 }
 0x132   :  { %v416_v47 = vadd.f32 %v415_v46, %v414_v44  ;;  %v425_v33 = vadd.f32 %v424_v32, %v423_v45 }
 0x134   :  { %474 = vmatmul.f32.vlgmr.msra.gmra.mxu0 %v416_v47  ;;  %494 = vmatmul.f32.vlgmr.msra.gmra.mxu1 %v425_v33  ;;  %v624_v33 = vld [vmem:[%s2475_s4] sm:$0x1] }
 0x135   :  { %654 = vmatpush.msra.mxu0 %v501_v60  ;;  %674 = vmatpush.msra.mxu1 %v502_v61 }
 0x137   :  { %655 = vmatpush.msra.mxu0 %v499_v48  ;;  %675 = vmatpush.msra.mxu1 %v500_v49 }
 0x1b1   :  { %v475_v50 = vpop.f32.mrf.mxu0  ;;  %v495_v51 = vpop.f32.mrf.mxu1 }
 0x1b2   :  { %v496_v52 = vadd.f32 %v495_v51, %v475_v50 }
 0x1b4   :  { %v498_v53 = vmul.f32 0.001953125, %v496_v52 }
 0x1b6   :  { %1400 = vmatmul.msk.f32.vlgmr.msrb.gmra.mxu0 %vm503_vm2, %v498_v53  ;;  %1401 = vmatmul.msk.f32.vlgmr.msrb.gmra.mxu1 %vm503_vm2, %v498_v53 }
 0x233   :  { %v524_v54 = vpop.f32.mrf.mxu0  ;;  %v544_v55 = vpop.f32.mrf.mxu1 }
 0x234   :  { %v547_v56 = vperm.slane %v524_v54, 0  ;;  %v548_v57 = vperm.slane %v544_v55, 0 }
 0x236   :  { %v1979_v58 = vsub.f32 %v400_v26, %v547_v56  ;;  %v1981_v59 = vsub.f32 %v402_v14, %v547_v56  ;;  %v1983_v60 = vsub.f32 %v404_v28, %v547_v56  ;;  %v1985_v61 = vsub.f32 %v401_v27, %v548_v57 }
 0x237   :  { %v1987_v62 = vsub.f32 %v403_v15, %v548_v57  ;;  %v1989_v63 = vsub.f32 %v405_v10, %v548_v57  ;;  %v1991_v0 = vsub.f32 %v406_v36, %v547_v56  ;;  %v556_v3 = vsub.f32 %v407_v19, %v548_v57 }
 0x238   :  { %v557_v1 = vmul.f32 %v1979_v58, %v1979_v58  ;;  %v559_v2 = vmul.f32 %v1981_v59, %v1981_v59  ;;  %v558_v12 = vmul.f32 %v1985_v61, %v1985_v61  ;;  %v561_v14 = vmul.f32 %v1983_v60, %v1983_v60 }
 0x239   :  { %v560_v13 = vmul.f32 %v1987_v62, %v1987_v62  ;;  %v562_v18 = vmul.f32 %v1989_v63, %v1989_v63  ;;  %v563_v24 = vmul.f32 %v1991_v0, %v1991_v0  ;;  %v564_v26 = vmul.f32 %v556_v3, %v556_v3 }
 0x23a   :  { %v565_v15 = vadd.f32 %v559_v2, %v557_v1 }
 0x23b   :  { %v574_v23 = vadd.f32 %v560_v13, %v558_v12 }
 0x23c   :  { %v566_v25 = vadd.f32 %v565_v15, %v561_v14 }
 0x23d   :  { %v575_v27 = vadd.f32 %v574_v23, %v562_v18 }
 0x23e   :  { %v567_v28 = vadd.f32 %v566_v25, %v563_v24 }
 0x23f   :  { %v576_v10 = vadd.f32 %v575_v27, %v564_v26 }
 0x240   :  { %v568_v29 = vrot.slane %v567_v28, 4 }
 0x241   :  { %v577_v11 = vrot.slane %v576_v10, 4 }
 0x242   :  { %v569_v30 = vadd.f32 %v568_v29, %v567_v28 }
 0x243   :  { %v578_v8 = vadd.f32 %v577_v11, %v576_v10 }
 0x244   :  { %v570_v31 = vrot.slane %v569_v30, 2 }
 0x245   :  { %v579_v9 = vrot.slane %v578_v8, 2 }
 0x246   :  { %v571_v34 = vadd.f32 %v570_v31, %v569_v30  ;;  %v1453_v31 = vld [vmem:[%s2476_s8 + $0x1f8] sm:$0xff] }
 0x247   :  { %v580_v35 = vadd.f32 %v579_v9, %v578_v8  ;;  %v1437_v8 = vld [vmem:[%s2476_s8 + $0x178] sm:$0xff]  ;;  %v1436_v9 = vld [vmem:[%s2476_s8 + $0x170] sm:$0xff] }
 0x248   :  { %v572_v36 = vrot.slane %v571_v34, 1 }
 0x249   :  { %v581_v19 = vrot.slane %v580_v35, 1 }
 0x24a   :  { %v573_v37 = vadd.f32 %v572_v36, %v571_v34  ;;  %v1452_v34 = vld [vmem:[%s2476_s8 + $0x1f0] sm:$0xff]  ;;  %v1434_v36 = vld [vmem:[%s2476_s8 + $0x160] sm:$0xff] }
 0x24b   :  { %v582_v22 = vadd.f32 %v581_v19, %v580_v35  ;;  %v1451_v35 = vld [vmem:[%s2476_s8 + $0x1e8] sm:$0xff]  ;;  %v1450_v19 = vld [vmem:[%s2476_s8 + $0x1e0] sm:$0xff] }
 0x24c   :  { %599 = vmatmul.f32.vlgmr.msrb.gmra.mxu2 %v573_v37  ;;  %v1449_v37 = vld [vmem:[%s2476_s8 + $0x1d8] sm:$0xff] }
 0x24d   :  { %619 = vmatmul.f32.vlgmr.msrb.gmra.mxu3 %v582_v22  ;;  %v1432_v22 = vld [vmem:[%s2476_s8 + $0x150] sm:$0xff] }
 0x254   :  { %1404 = vmatmul.msk.f32.vlgmr.msra.gmra.mxu2 %vm503_vm2, %v690_v38 }
 0x255   :  { %1405 = vmatmul.msk.f32.vlgmr.msra.gmra.mxu3 %vm503_vm2, %v690_v38  ;;  %v1448_v38 = vld [vmem:[%s2476_s8 + $0x1d0] sm:$0xff] }
 0x2cf   :  { %v600_v39 = vpop.f32.mrf.mxu2 }
 0x2d0   :  { %v620_v40 = vpop.f32.mrf.mxu3 }
 0x2d1   :  { %v621_v41 = vadd.f32 %v620_v40, %v600_v39  ;;  %v1447_v39 = vld [vmem:[%s2476_s8 + $0x1c8] sm:$0xff]  ;;  %v1430_v40 = vld [vmem:[%s2476_s8 + $0x140] sm:$0xff] }
 0x2d3   :  { %v623_v42 = vmul.f32 0.001953125, %v621_v41  ;;  %v1446_v41 = vld [vmem:[%s2476_s8 + $0x1c0] sm:$0xff] }
 0x2d5   :  { %v625_v43 = vadd.f32 1e-05, %v623_v42  ;;  %v1445_v42 = vld [vmem:[%s2476_s8 + $0x1b8] sm:$0xff] }
 0x2d7   :  { %1497 = vrsqrt.f32 %v625_v43  ;;  %vm632_vm4 = vweird.f32 %v625_v43  ;;  %v711_v51 = vpop.f32.mrf.mxu2 }
 0x2d8   :  { %v731_v52 = vpop.f32.mrf.mxu3  ;;  %v734_v57 = vperm.slane %v711_v51, 0  ;;  %v1439_v51 = vld [vmem:[%s2476_s8 + $0x188] sm:$0xff] }
 0x2d9   :  { %v735_v1 = vperm.slane %v731_v52, 0  ;;  %v882_v52 = vld [vmem:[%s2476_s8 + $0x70] sm:$0xff] }
 0x2dd   :  { %v1498_v44 = vpop.eup %1497 }
 0x2de   :  { %v627_v45 = vmul.f32 %v1498_v44, %v625_v43  ;;  %vm633_vm3 = vweird.f32 %v1498_v44  ;;  %v1428_v43 = vld [vmem:[%s2476_s8 + $0x130] sm:$0xff] }
 0x2df   :  { %vm634_vm5 = vmor %vm632_vm4, %vm633_vm3 }
 0x2e0   :  { %v628_v46 = vmul.f32 %v1498_v44, %v627_v45  ;;  %v1443_v45 = vld [vmem:[%s2476_s8 + $0x1a8] sm:$0xff] }
 0x2e2   :  { %v629_v32 = vmul.f32 0.5, %v628_v46  ;;  %v1426_v46 = vld [vmem:[%s2476_s8 + $0x120] sm:$0xff] }
 0x2e4   :  { %v630_v47 = vsub.f32 1.5, %v629_v32  ;;  %v1442_v32 = vld [vmem:[%s2476_s8 + $0x1a0] sm:$0xff] }
 0x2e6   :  { %v631_v48 = vmul.f32 %v1498_v44, %v630_v47  ;;  %v1441_v47 = vld [vmem:[%s2476_s8 + $0x198] sm:$0xff] }
 0x2e8   :  { %v635_v49 = vsel %vm634_vm5, %v1498_v44, %v631_v48  ;;  %v1444_v44 = vld [vmem:[%s2476_s8 + $0x1b0] sm:$0xff] }
 0x2e9   :  { %v636_v50 = vmul.f32 %v635_v49, %v624_v33  ;;  %v1424_v33 = vld [vmem:[%s2476_s8 + $0x110] sm:$0xff]  ;;  %v883_v49 = vld [vmem:[%s2476_s8 + $0x78] sm:$0xff] }
 0x2ea   :  { %v1440_v48 = vld [vmem:[%s2476_s8 + $0x190] sm:$0xff] }
 0x2eb   :  { %1402 = vmatmul.msk.f32.vlgmr.msra.gmra.mxu0 %vm503_vm2, %v636_v50  ;;  %1403 = vmatmul.msk.f32.vlgmr.msra.gmra.mxu1 %vm503_vm2, %v636_v50  ;;  %v899_v50 = vld [vmem:[%s2476_s8 + $0xf8] sm:$0xff] }
 0x368   :  { %v657_v53 = vpop.f32.mrf.mxu0  ;;  %v677_v54 = vpop.f32.mrf.mxu1 }
 0x369   :  { %v680_v55 = vperm.slane %v657_v53, 0  ;;  %v681_v56 = vperm.slane %v677_v54, 0  ;;  %v898_v53 = vld [vmem:[%s2476_s8 + $0xf0] sm:$0xff]  ;;  %v1438_v54 = vld [vmem:[%s2476_s8 + $0x180] sm:$0xff] }
 0x36b   :  { %v688_v2 = vmul.f32 %v680_v55, %v1991_v0  ;;  %v689_v12 = vmul.f32 %v681_v56, %v556_v3  ;;  %v686_v13 = vmul.f32 %v680_v55, %v1983_v60  ;;  %v687_v14 = vmul.f32 %v681_v56, %v1989_v63 }
 0x36c   :  { %v684_v15 = vmul.f32 %v680_v55, %v1981_v59  ;;  %v685_v18 = vmul.f32 %v681_v56, %v1987_v62  ;;  %v682_v23 = vmul.f32 %v680_v55, %v1979_v58  ;;  %v683_v24 = vmul.f32 %v681_v56, %v1985_v61  ;;  %v881_v55 = vld [vmem:[%s2476_s8 + $0x68] sm:$0xff] }
 0x36d   :  { %v742_v25 = vadd.f32 %v734_v57, %v688_v2  ;;  %v743_v26 = vadd.f32 %v735_v1, %v689_v12  ;;  %v740_v27 = vadd.f32 %v734_v57, %v686_v13  ;;  %v741_v28 = vadd.f32 %v735_v1, %v687_v14  ;;  %v897_v56 = vld [vmem:[%s2476_s8 + $0xe8] sm:$0xff]  ;;  %v880_v2 = vld [vmem:[%s2476_s8 + $0x60] sm:$0xff]  ;;  %v1468_v13 = vld [vmem:[%s2476_s8 + $0x270] sm:$0xff] }
 0x36e   :  { %v738_v3 = vadd.f32 %v734_v57, %v684_v15  ;;  %v739_v60 = vadd.f32 %v735_v1, %v685_v18  ;;  %v736_v58 = vadd.f32 %v734_v57, %v682_v23  ;;  %v737_v61 = vadd.f32 %v735_v1, %v683_v24  ;;  %v1469_v57 = vld [vmem:[%s2476_s8 + $0x278] sm:$0xff]  ;;  %v896_v12 = vld [vmem:[%s2476_s8 + $0xe0] sm:$0xff]  ;;  %v1484_v14 = vld [vmem:[%s2476_s8 + $0x2f0] sm:$0xff] }
 0x36f   :  { %v2024_v10 = vmax.f32 %v742_v25, 0.0  ;;  %v2026_v0 = vmax.f32 %v743_v26, 0.0  ;;  %v2030_v59 = vmax.f32 %v740_v27, 0.0  ;;  %v2032_v62 = vmax.f32 %v741_v28, 0.0  ;;  %v1485_v1 = vld [vmem:[%s2476_s8 + $0x2f8] sm:$0xff]  ;;  %v1467_v23 = vld [vmem:[%s2476_s8 + $0x268] sm:$0xff] }
 0x370   :  { %v2038_v63 = vmax.f32 %v738_v3, 0.0  ;;  %v2040_v29 = vmax.f32 %v739_v60, 0.0  ;;  %v2046_v11 = vmax.f32 %v736_v58, 0.0  ;;  %v2048_v30 = vmax.f32 %v737_v61, 0.0  ;;  %v879_v15 = vld [vmem:[%s2476_s8 + $0x58] sm:$0xff]  ;;  %v1483_v24 = vld [vmem:[%s2476_s8 + $0x2e8] sm:$0xff] }
 0x371   :  { %764 = vmatpush.msrb.mxu0 %v2024_v10  ;;  %793 = vmatpush.msrb.mxu1 %v2026_v0  ;;  %v895_v18 = vld [vmem:[%s2476_s8 + $0xd8] sm:$0xff]  ;;  %v878_v25 = vld [vmem:[%s2476_s8 + $0x50] sm:$0xff]  ;;  %v877_v27 = vld [vmem:[%s2476_s8 + $0x48] sm:$0xff] }
 0x372   :  { %822 = vmatpush.msrb.mxu2 %v2024_v10  ;;  %851 = vmatpush.msrb.mxu3 %v2026_v0  ;;  %v894_v26 = vld [vmem:[%s2476_s8 + $0xd0] sm:$0xff]  ;;  %v893_v28 = vld [vmem:[%s2476_s8 + $0xc8] sm:$0xff]  ;;  %v1466_v3 = vld [vmem:[%s2476_s8 + $0x260] sm:$0xff] }
 0x373   :  { %765 = vmatpush.msrb.mxu0 %v2030_v59  ;;  %794 = vmatpush.msrb.mxu1 %v2032_v62  ;;  %v1482_v60 = vld [vmem:[%s2476_s8 + $0x2e0] sm:$0xff] }
 0x374   :  { %823 = vmatpush.msrb.mxu2 %v2030_v59  ;;  %852 = vmatpush.msrb.mxu3 %v2032_v62  ;;  %v876_v58 = vld [vmem:[%s2476_s8 + $0x40] sm:$0xff] }
 0x375   :  { %766 = vmatpush.msrb.mxu0 %v2038_v63  ;;  %795 = vmatpush.msrb.mxu1 %v2040_v29  ;;  %v892_v61 = vld [vmem:[%s2476_s8 + $0xc0] sm:$0xff] }
 0x376   :  { %824 = vmatpush.msrb.mxu2 %v2038_v63  ;;  %853 = vmatpush.msrb.mxu3 %v2040_v29 }
 0x377   :  { %767 = vmatpush.msrb.mxu0 %v2046_v11  ;;  %796 = vmatpush.msrb.mxu1 %v2048_v30 }
 0x378   :  { %825 = vmatpush.msrb.mxu2 %v2046_v11  ;;  %854 = vmatpush.msrb.mxu3 %v2048_v30 }
 0x379   :  { %1406 = vmatmul.msk.f32.vlgmr.msrb.gmra.mxu0 %vm56_vm0, %v1604_v4  ;;  %1410 = vmatmul.msk.f32.vlgmr.msrb.gmra.mxu1 %vm56_vm0, %v1604_v4  ;;  %v1435_v4 = vld [vmem:[%s2476_s8 + $0x168] sm:$0xff] }
 0x37a   :  { %933 = vmatpush.msra.mxu0 %v1437_v8  ;;  %962 = vmatpush.msra.mxu1 %v1453_v31  ;;  %v1464_v8 = vld [vmem:[%s2476_s8 + $0x250] sm:$0xff] }
 0x37b   :  { %1414 = vmatmul.msk.f32.vlgmr.msrb.gmra.mxu2 %vm56_vm0, %v1609_v5  ;;  %1418 = vmatmul.msk.f32.vlgmr.msrb.gmra.mxu3 %vm56_vm0, %v1609_v5  ;;  %v1433_v5 = vld [vmem:[%s2476_s8 + $0x158] sm:$0xff]  ;;  %v1480_v31 = vld [vmem:[%s2476_s8 + $0x2d0] sm:$0xff] }
 0x37c   :  { %934 = vmatpush.msra.mxu0 %v1436_v9  ;;  %963 = vmatpush.msra.mxu1 %v1452_v34  ;;  %v874_v9 = vld [vmem:[%s2476_s8 + $0x30] sm:$0xff] }
 0x37d   :  { %991 = vmatpush.msra.mxu2 %v883_v49  ;;  %1020 = vmatpush.msra.mxu3 %v899_v50  ;;  %v890_v34 = vld [vmem:[%s2476_s8 + $0xb0] sm:$0xff]  ;;  %v1455_v49 = vld [vmem:[%s2476_s8 + $0x208] sm:$0xff] }
 0x37e   :  { %935 = vmatpush.msra.mxu0 %v1435_v4  ;;  %964 = vmatpush.msra.mxu1 %v1451_v35  ;;  %v873_v4 = vld [vmem:[%s2476_s8 + $0x28] sm:$0xff] }
 0x37f   :  { %992 = vmatpush.msra.mxu2 %v882_v52  ;;  %1021 = vmatpush.msra.mxu3 %v898_v53  ;;  %v1463_v35 = vld [vmem:[%s2476_s8 + $0x248] sm:$0xff] }
 0x380   :  { %936 = vmatpush.msra.mxu0 %v1434_v36  ;;  %965 = vmatpush.msra.mxu1 %v1450_v19  ;;  %v1479_v36 = vld [vmem:[%s2476_s8 + $0x2c8] sm:$0xff] }
 0x381   :  { %1407 = vmatmul.msk.f32.gmra.mxu0 %vm56_vm0, %v1662_v16  ;;  %1411 = vmatmul.msk.f32.gmra.mxu1 %vm56_vm0, %v1662_v16  ;;  %v1431_v16 = vld [vmem:[%s2476_s8 + $0x148] sm:$0xff] }
 0x382   :  { %937 = vmatpush.msra.mxu0 %v1433_v5  ;;  %966 = vmatpush.msra.mxu1 %v1449_v37  ;;  %v889_v19 = vld [vmem:[%s2476_s8 + $0xa8] sm:$0xff]  ;;  %v872_v5 = vld [vmem:[%s2476_s8 + $0x20] sm:$0xff] }
 0x383   :  { %1415 = vmatmul.msk.f32.gmra.mxu2 %vm56_vm0, %v1667_v17  ;;  %1419 = vmatmul.msk.f32.gmra.mxu3 %vm56_vm0, %v1667_v17  ;;  %v1429_v17 = vld [vmem:[%s2476_s8 + $0x138] sm:$0xff]  ;;  %v1462_v37 = vld [vmem:[%s2476_s8 + $0x240] sm:$0xff]  ;;  %v1471_v50 = vld [vmem:[%s2476_s8 + $0x288] sm:$0xff] }
 0x384   :  { %938 = vmatpush.msra.mxu0 %v1432_v22  ;;  %967 = vmatpush.msra.mxu1 %v1448_v38  ;;  %v1478_v22 = vld [vmem:[%s2476_s8 + $0x2c0] sm:$0xff]  ;;  %v1461_v38 = vld [vmem:[%s2476_s8 + $0x238] sm:$0xff] }
 0x385   :  { %993 = vmatpush.msra.mxu2 %v881_v55  ;;  %1022 = vmatpush.msra.mxu3 %v897_v56 }
 0x386   :  { %939 = vmatpush.msra.mxu0 %v1431_v16  ;;  %968 = vmatpush.msra.mxu1 %v1447_v39  ;;  %v1477_v16 = vld [vmem:[%s2476_s8 + $0x2b8] sm:$0xff] }
 0x387   :  { %994 = vmatpush.msra.mxu2 %v880_v2  ;;  %1023 = vmatpush.msra.mxu3 %v896_v12  ;;  %v887_v39 = vld [vmem:[%s2476_s8 + $0x98] sm:$0xff] }
 0x388   :  { %940 = vmatpush.msra.mxu0 %v1430_v40  ;;  %969 = vmatpush.msra.mxu1 %v1446_v41  ;;  %v870_v40 = vld [vmem:[%s2476_s8 + $0x10] sm:$0xff] }
 0x389   :  { %1408 = vmatmul.msk.f32.gmra.mxu0 %vm56_vm0, %v1618_v6  ;;  %1412 = vmatmul.msk.f32.gmra.mxu1 %vm56_vm0, %v1618_v6  ;;  %v1427_v6 = vld [vmem:[%s2476_s8 + $0x128] sm:$0xff]  ;;  %v1460_v41 = vld [vmem:[%s2476_s8 + $0x230] sm:$0xff] }
 0x38a   :  { %941 = vmatpush.msra.mxu0 %v1429_v17  ;;  %970 = vmatpush.msra.mxu1 %v1445_v42  ;;  %v1476_v17 = vld [vmem:[%s2476_s8 + $0x2b0] sm:$0xff]  ;;  %v869_v42 = vld [vmem:[%s2476_s8 + $0x8] sm:$0xff] }
 0x38b   :  { %1416 = vmatmul.msk.f32.gmra.mxu2 %vm56_vm0, %v1623_v7  ;;  %1420 = vmatmul.msk.f32.gmra.mxu3 %vm56_vm0, %v1623_v7  ;;  %v1425_v7 = vld [vmem:[%s2476_s8 + $0x118] sm:$0xff] }
 0x38c   :  { %942 = vmatpush.msra.mxu0 %v1428_v43  ;;  %971 = vmatpush.msra.mxu1 %v1444_v44  ;;  %v886_v43 = vld [vmem:[%s2476_s8 + $0x90] sm:$0xff]  ;;  %v1459_v44 = vld [vmem:[%s2476_s8 + $0x228] sm:$0xff] }
 0x38d   :  { %995 = vmatpush.msra.mxu2 %v879_v15  ;;  %1024 = vmatpush.msra.mxu3 %v895_v18 }
 0x38e   :  { %943 = vmatpush.msra.mxu0 %v1427_v6  ;;  %972 = vmatpush.msra.mxu1 %v1443_v45  ;;  %v1475_v6 = vld [vmem:[%s2476_s8 + $0x2a8] sm:$0xff]  ;;  %v868_v45 = vld [vmem:[%s2476_s8] sm:$0xff] }
 0x38f   :  { %996 = vmatpush.msra.mxu2 %v878_v25  ;;  %1025 = vmatpush.msra.mxu3 %v894_v26 }
 0x390   :  { %944 = vmatpush.msra.mxu0 %v1426_v46  ;;  %973 = vmatpush.msra.mxu1 %v1442_v32  ;;  %v885_v46 = vld [vmem:[%s2476_s8 + $0x88] sm:$0xff]  ;;  %v884_v32 = vld [vmem:[%s2476_s8 + $0x80] sm:$0xff] }
 0x391   :  { %1409 = vmatmul.msk.f32.gmra.mxu0 %vm56_vm0, %v1678_v20  ;;  %1413 = vmatmul.msk.f32.gmra.mxu1 %vm56_vm0, %v1678_v20  ;;  %v1423_v20 = vld [vmem:[%s2476_s8 + $0x108] sm:$0xff] }
 0x392   :  { %945 = vmatpush.msra.mxu0 %v1425_v7  ;;  %974 = vmatpush.msra.mxu1 %v1441_v47  ;;  %v1457_v7 = vld [vmem:[%s2476_s8 + $0x218] sm:$0xff] }
 0x393   :  { %1417 = vmatmul.msk.f32.gmra.mxu2 %vm56_vm0, %v1683_v21  ;;  %1421 = vmatmul.msk.f32.gmra.mxu3 %vm56_vm0, %v1683_v21  ;;  %v1422_v21 = vld [vmem:[%s2476_s8 + $0x100] sm:$0xff]  ;;  %v1473_v47 = vld [vmem:[%s2476_s8 + $0x298] sm:$0xff] }
 0x394   :  { %946 = vmatpush.msra.mxu0 %v1424_v33  ;;  %975 = vmatpush.msra.mxu1 %v1440_v48  ;;  %v1456_v33 = vld [vmem:[%s2476_s8 + $0x210] sm:$0xff] }
 0x395   :  { %997 = vmatpush.msra.mxu2 %v877_v27  ;;  %1026 = vmatpush.msra.mxu3 %v893_v28  ;;  %v1472_v48 = vld [vmem:[%s2476_s8 + $0x290] sm:$0xff] }
 0x396   :  { %947 = vmatpush.msra.mxu0 %v1423_v20  ;;  %976 = vmatpush.msra.mxu1 %v1439_v51  ;;  %v1454_v20 = vld [vmem:[%s2476_s8 + $0x200] sm:$0xff] }
 0x397   :  { %998 = vmatpush.msra.mxu2 %v876_v58  ;;  %1027 = vmatpush.msra.mxu3 %v892_v61  ;;  %v1470_v51 = vld [vmem:[%s2476_s8 + $0x280] sm:$0xff] }
 0x398   :  { %948 = vmatpush.msra.mxu0 %v1422_v21  ;;  %977 = vmatpush.msra.mxu1 %v1438_v54 }
 0x399   :  { %949 = vmatmul.f32.vlgmr.msra.gmra.mxu0 %v2046_v11  ;;  %978 = vmatmul.f32.vlgmr.msra.gmra.mxu1 %v2048_v30  ;;  %v1465_v11 = vld [vmem:[%s2476_s8 + $0x258] sm:$0xff] }
 0x39a   :  { %1082 = vmatpush.msrb.mxu0 %v1469_v57  ;;  %1111 = vmatpush.msrb.mxu1 %v1485_v1  ;;  %v891_v30 = vld [vmem:[%s2476_s8 + $0xb8] sm:$0xff] }
 0x39b   :  { %1028 = vmatpush.msra.mxu3 %v891_v30  ;;  %v1163_v30 = vld [vmem:[%s2477_s11 + $0x50] sm:$0xff] }
 0x39c   :  { %1083 = vmatpush.msrb.mxu0 %v1468_v13  ;;  %1112 = vmatpush.msrb.mxu1 %v1484_v14 }
 0x39d   :  { %1029 = vmatpush.msra.mxu3 %v890_v34  ;;  %v1161_v34 = vld [vmem:[%s2477_s11 + $0x40] sm:$0xff] }
 0x39e   :  { %1084 = vmatpush.msrb.mxu0 %v1467_v23  ;;  %1113 = vmatpush.msrb.mxu1 %v1483_v24 }
 0x39f   :  { %1030 = vmatpush.msra.mxu3 %v889_v19  ;;  %v1159_v19 = vld [vmem:[%s2477_s11 + $0x30] sm:$0xff] }
 0x3a0   :  { %1085 = vmatpush.msrb.mxu0 %v1466_v3  ;;  %1114 = vmatpush.msrb.mxu1 %v1482_v60  ;;  %v1168_v3 = vld [vmem:[%s2477_s11 + $0x78] sm:$0xff]  ;;  %v1167_v60 = vld [vmem:[%s2477_s11 + $0x70] sm:$0xff] }
 0x3a1   :  { %952 = vmatmul.f32.gmra.mxu0 %v2038_v63  ;;  %981 = vmatmul.f32.gmra.mxu1 %v2040_v29  ;;  %v1481_v63 = vld [vmem:[%s2476_s8 + $0x2d8] sm:$0xff] }
 0x3a2   :  { %v875_v29 = vld [vmem:[%s2476_s8 + $0x38] sm:$0xff]  ;;  %1086 = vmatpush.msrb.mxu0 %v1465_v11  ;;  %1115 = vmatpush.msrb.mxu1 %v1481_v63  ;;  %v1166_v11 = vld [vmem:[%s2477_s11 + $0x68] sm:$0xff]  ;;  %v1165_v63 = vld [vmem:[%s2477_s11 + $0x60] sm:$0xff] }
 0x3a3   :  { %999 = vmatpush.msra.mxu2 %v875_v29  ;;  %v1164_v29 = vld [vmem:[%s2477_s11 + $0x58] sm:$0xff] }
 0x3a4   :  { %1087 = vmatpush.msrb.mxu0 %v1464_v8  ;;  %1116 = vmatpush.msrb.mxu1 %v1480_v31  ;;  %v1162_v8 = vld [vmem:[%s2477_s11 + $0x48] sm:$0xff] }
 0x3a5   :  { %1000 = vmatpush.msra.mxu2 %v874_v9 }
 0x3a6   :  { %1088 = vmatpush.msrb.mxu0 %v1463_v35  ;;  %1117 = vmatpush.msrb.mxu1 %v1479_v36 }
 0x3a7   :  { %1001 = vmatpush.msra.mxu2 %v873_v4  ;;  %v1160_v4 = vld [vmem:[%s2477_s11 + $0x38] sm:$0xff] }
 0x3a8   :  { %1089 = vmatpush.msrb.mxu0 %v1462_v37  ;;  %1118 = vmatpush.msrb.mxu1 %v1478_v22 }
 0x3a9   :  { %955 = vmatmul.f32.gmra.mxu0 %v2030_v59  ;;  %984 = vmatmul.f32.gmra.mxu1 %v2032_v62  ;;  %v888_v59 = vld [vmem:[%s2476_s8 + $0xa0] sm:$0xff]  ;;  %v871_v62 = vld [vmem:[%s2476_s8 + $0x18] sm:$0xff] }
 0x3aa   :  { %1002 = vmatpush.msra.mxu2 %v872_v5  ;;  %1031 = vmatpush.msra.mxu3 %v888_v59  ;;  %v1158_v5 = vld [vmem:[%s2477_s11 + $0x28] sm:$0xff]  ;;  %v1157_v59 = vld [vmem:[%s2477_s11 + $0x20] sm:$0xff] }
 0x3ab   :  { %1090 = vmatpush.msrb.mxu0 %v1461_v38  ;;  %1119 = vmatpush.msrb.mxu1 %v1477_v16 }
 0x3ac   :  { %1003 = vmatpush.msra.mxu2 %v871_v62  ;;  %1032 = vmatpush.msra.mxu3 %v887_v39  ;;  %v1156_v62 = vld [vmem:[%s2477_s11 + $0x18] sm:$0xff]  ;;  %v1155_v39 = vld [vmem:[%s2477_s11 + $0x10] sm:$0xff] }
 0x3ad   :  { %1091 = vmatpush.msrb.mxu0 %v1460_v41  ;;  %1120 = vmatpush.msrb.mxu1 %v1476_v17  ;;  %v1153_v41 = vld [vmem:[%s2477_s11] sm:$0xff] }
 0x3ae   :  { %1004 = vmatpush.msra.mxu2 %v870_v40  ;;  %1033 = vmatpush.msra.mxu3 %v886_v43  ;;  %v1154_v40 = vld [vmem:[%s2477_s11 + $0x8] sm:$0xff] }
 0x3af   :  { %1092 = vmatpush.msrb.mxu0 %v1459_v44  ;;  %1121 = vmatpush.msrb.mxu1 %v1475_v6  ;;  %v1190_v44 = vld [vmem:[%s2478_s12] sm:$0xff] }
 0x3b0   :  { %1005 = vmatpush.msra.mxu2 %v869_v42  ;;  %1034 = vmatpush.msra.mxu3 %v885_v46 }
 0x3b1   :  { %958 = vmatmul.f32.gmra.mxu0 %v2024_v10  ;;  %987 = vmatmul.f32.gmra.mxu1 %v2026_v0  ;;  %v1458_v10 = vld [vmem:[%s2476_s8 + $0x220] sm:$0xff] }
 0x3b2   :  { %1006 = vmatpush.msra.mxu2 %v868_v45  ;;  %v1474_v0 = vld [vmem:[%s2476_s8 + $0x2a0] sm:$0xff]  ;;  %1093 = vmatpush.msrb.mxu0 %v1458_v10 }
 0x3b3   :  { %1122 = vmatpush.msrb.mxu1 %v1474_v0  ;;  %1035 = vmatpush.msra.mxu3 %v884_v32 }
 0x3b4   :  { %1094 = vmatpush.msrb.mxu0 %v1457_v7  ;;  %1169 = vmatpush.msrb.mxu2 %v1168_v3 }
 0x3b5   :  { %1123 = vmatpush.msrb.mxu1 %v1473_v47  ;;  %1210 = vmatpush.msrb.mxu3 %v1190_v44 }
 0x3b6   :  { %1095 = vmatpush.msrb.mxu0 %v1456_v33  ;;  %1170 = vmatpush.msrb.mxu2 %v1167_v60 }
 0x3b7   :  { %1124 = vmatpush.msrb.mxu1 %v1472_v48 }
 0x3b8   :  { %1096 = vmatpush.msrb.mxu0 %v1455_v49  ;;  %1171 = vmatpush.msrb.mxu2 %v1166_v11 }
 0x3b9   :  { %1125 = vmatpush.msrb.mxu1 %v1471_v50 }
 0x3ba   :  { %1097 = vmatpush.msrb.mxu0 %v1454_v20  ;;  %1172 = vmatpush.msrb.mxu2 %v1165_v63 }
 0x3bb   :  { %1126 = vmatpush.msrb.mxu1 %v1470_v51 }
 0x3bc   :  { %1233 = vmatpush.msra.mxu0 %v1168_v3  ;;  %1173 = vmatpush.msrb.mxu2 %v1164_v29 }
 0x3be   :  { %1234 = vmatpush.msra.mxu0 %v1167_v60  ;;  %1174 = vmatpush.msrb.mxu2 %v1163_v30 }
 0x3c0   :  { %1235 = vmatpush.msra.mxu0 %v1166_v11  ;;  %1175 = vmatpush.msrb.mxu2 %v1162_v8 }
 0x3c2   :  { %1236 = vmatpush.msra.mxu0 %v1165_v63  ;;  %1176 = vmatpush.msrb.mxu2 %v1161_v34 }
 0x3c4   :  { %1237 = vmatpush.msra.mxu0 %v1164_v29  ;;  %1177 = vmatpush.msrb.mxu2 %v1160_v4 }
 0x3c6   :  { %1238 = vmatpush.msra.mxu0 %v1163_v30  ;;  %1178 = vmatpush.msrb.mxu2 %v1159_v19 }
 0x3c8   :  { %1239 = vmatpush.msra.mxu0 %v1162_v8  ;;  %1179 = vmatpush.msrb.mxu2 %v1158_v5 }
 0x3ca   :  { %1240 = vmatpush.msra.mxu0 %v1161_v34  ;;  %1180 = vmatpush.msrb.mxu2 %v1157_v59 }
 0x3cc   :  { %1241 = vmatpush.msra.mxu0 %v1160_v4  ;;  %1181 = vmatpush.msrb.mxu2 %v1156_v62 }
 0x3ce   :  { %1242 = vmatpush.msra.mxu0 %v1159_v19  ;;  %1182 = vmatpush.msrb.mxu2 %v1155_v39 }
 0x3d0   :  { %1243 = vmatpush.msra.mxu0 %v1158_v5  ;;  %1183 = vmatpush.msrb.mxu2 %v1154_v40 }
 0x3d2   :  { %1244 = vmatpush.msra.mxu0 %v1157_v59  ;;  %1184 = vmatpush.msrb.mxu2 %v1153_v41 }
 0x3d4   :  { %1245 = vmatpush.msra.mxu0 %v1156_v62 }
 0x3d6   :  { %1246 = vmatpush.msra.mxu0 %v1155_v39  ;;  %v1295_v39 = vld [vmem:[%s2479_s10] sm:$0x1] }
 0x3d8   :  { %1247 = vmatpush.msra.mxu0 %v1154_v40 }
 0x3da   :  { %1248 = vmatpush.msra.mxu0 %v1153_v41 }
 0x3f6   :  { %v769_v52 = vpop.f32.mrf.mxu0  ;;  %v798_v53 = vpop.f32.mrf.mxu1 }
 0x3f7   :  { %1007 = vmatmul.f32.vlgmr.msra.gmra.mxu2 %v769_v52  ;;  %1036 = vmatmul.f32.vlgmr.msra.gmra.mxu3 %v798_v53 }
 0x3f8   :  { %1285 = vmatpush.msra.mxu2 %v1190_v44  ;;  %1314 = vmatpush.msra.mxu3 %v1190_v44 }
 0x3fe   :  { %v772_v21 = vpop.f32.mrf.mxu0  ;;  %v801_v54 = vpop.f32.mrf.mxu1 }
 0x3ff   :  { %v827_v55 = vpop.f32.mrf.mxu2  ;;  %v856_v56 = vpop.f32.mrf.mxu3  ;;  %1010 = vmatmul.f32.gmra.mxu2 %v772_v21  ;;  %1039 = vmatmul.f32.gmra.mxu3 %v801_v54 }
 0x400   :  { %1098 = vmatmul.f32.vlgmr.msrb.gmra.mxu0 %v827_v55  ;;  %1127 = vmatmul.f32.vlgmr.msrb.gmra.mxu1 %v856_v56 }
 0x406   :  { %v775_v57 = vpop.f32.mrf.mxu0  ;;  %v804_v1 = vpop.f32.mrf.mxu1 }
 0x407   :  { %v830_v2 = vpop.f32.mrf.mxu2  ;;  %v859_v12 = vpop.f32.mrf.mxu3  ;;  %1013 = vmatmul.f32.gmra.mxu2 %v775_v57  ;;  %1042 = vmatmul.f32.gmra.mxu3 %v804_v1 }
 0x408   :  { %1101 = vmatmul.f32.gmra.mxu0 %v830_v2  ;;  %1130 = vmatmul.f32.gmra.mxu1 %v859_v12 }
 0x40e   :  { %v778_v13 = vpop.f32.mrf.mxu0  ;;  %v807_v14 = vpop.f32.mrf.mxu1 }
 0x40f   :  { %v833_v15 = vpop.f32.mrf.mxu2  ;;  %v862_v18 = vpop.f32.mrf.mxu3  ;;  %1016 = vmatmul.f32.gmra.mxu2 %v778_v13  ;;  %1045 = vmatmul.f32.gmra.mxu3 %v807_v14 }
 0x410   :  { %1104 = vmatmul.f32.gmra.mxu0 %v833_v15  ;;  %1133 = vmatmul.f32.gmra.mxu1 %v862_v18 }
 0x416   :  { %v2384_v25 = vpop.f32.mrf.mxu0  ;;  %v2386_v26 = vpop.f32.mrf.mxu1 }
 0x417   :  { %v836_v23 = vpop.f32.mrf.mxu2  ;;  %v865_v24 = vpop.f32.mrf.mxu3  ;;  %v980_v6 = vadd.f32 %v2386_v26, %v2384_v25 }
 0x418   :  { %1107 = vmatmul.f32.gmra.mxu0 %v836_v23  ;;  %1136 = vmatmul.f32.gmra.mxu1 %v865_v24 }
 0x41e   :  { %v2388_v27 = vpop.f32.mrf.mxu0  ;;  %v2390_v28 = vpop.f32.mrf.mxu1 }
 0x41f   :  { %v983_v43 = vadd.f32 %v2390_v28, %v2388_v27 }
 0x426   :  { %v956_v58 = vpop.f32.mrf.mxu0  ;;  %v985_v61 = vpop.f32.mrf.mxu1 }
 0x427   :  { %v986_v45 = vadd.f32 %v985_v61, %v956_v58 }
 0x42e   :  { %v959_v31 = vpop.f32.mrf.mxu0  ;;  %v988_v9 = vpop.f32.mrf.mxu1 }
 0x42f   :  { %v989_v53 = vadd.f32 %v988_v9, %v959_v31 }
 0x47a   :  { %v1008_v35 = vpop.f32.mrf.mxu2  ;;  %v1037_v36 = vpop.f32.mrf.mxu3 }
 0x47b   :  { %v1009_v32 = vadd.f32 %v1008_v35, %v980_v6 }
 0x47d   :  { %v1099_v37 = vpop.f32.mrf.mxu0  ;;  %v1128_v22 = vpop.f32.mrf.mxu1  ;;  %v1038_v50 = vadd.f32 %v1037_v36, %v1009_v32 }
 0x47e   :  { %v1129_v20 = vadd.f32 %v1128_v22, %v1099_v37 }
 0x480   :  { %v1140_v57 = vadd.f32 %v1129_v20, %v1038_v50 }
 0x482   :  { %v1011_v38 = vpop.f32.mrf.mxu2  ;;  %v1040_v16 = vpop.f32.mrf.mxu3 }
 0x483   :  { %v1012_v46 = vadd.f32 %v1011_v38, %v983_v43 }
 0x485   :  { %v1102_v17 = vpop.f32.mrf.mxu0  ;;  %v1131_v42 = vpop.f32.mrf.mxu1  ;;  %v1041_v48 = vadd.f32 %v1040_v16, %v1012_v46  ;;  %v1254_v46 = vld [vmem:[%s2480_s9] sm:$0x1] }
 0x486   :  { %v1132_v49 = vadd.f32 %v1131_v42, %v1102_v17 }
 0x488   :  { %v1141_v21 = vadd.f32 %v1132_v49, %v1041_v48 }
 0x48a   :  { %v1014_v10 = vpop.f32.mrf.mxu2  ;;  %v1043_v0 = vpop.f32.mrf.mxu3  ;;  %v1144_v14 = vadd.f32 %v1141_v21, %v1140_v57 }
 0x48b   :  { %v1015_v7 = vadd.f32 %v1014_v10, %v986_v45 }
 0x48d   :  { %v1105_v47 = vpop.f32.mrf.mxu0  ;;  %v1134_v33 = vpop.f32.mrf.mxu1  ;;  %v1044_v51 = vadd.f32 %v1043_v0, %v1015_v7 }
 0x48e   :  { %v1135_v52 = vadd.f32 %v1134_v33, %v1105_v47 }
 0x490   :  { %v1142_v1 = vadd.f32 %v1135_v52, %v1044_v51 }
 0x492   :  { %v1017_v54 = vpop.f32.mrf.mxu2  ;;  %v1046_v55 = vpop.f32.mrf.mxu3  ;;  %v1145_v18 = vadd.f32 %v1144_v14, %v1142_v1 }
 0x493   :  { %v1018_v56 = vadd.f32 %v1017_v54, %v989_v53 }
 0x495   :  { %v1047_v2 = vadd.f32 %v1046_v55, %v1018_v56  ;;  %v1108_v12 = vpop.f32.mrf.mxu0  ;;  %v1137_v13 = vpop.f32.mrf.mxu1 }
 0x496   :  { %v1138_v15 = vadd.f32 %v1137_v13, %v1108_v12 }
 0x498   :  { %v1143_v23 = vadd.f32 %v1138_v15, %v1047_v2 }
 0x49a   :  { %v1146_v24 = vadd.f32 %v1145_v18, %v1143_v23 }
 0x49c   :  { %v1147_v25 = vrot.slane %v1146_v24, 4 }
 0x49e   :  { %v1148_v26 = vadd.f32 %v1147_v25, %v1146_v24 }
 0x4a0   :  { %v1149_v27 = vrot.slane %v1148_v26, 2 }
 0x4a2   :  { %v1150_v28 = vadd.f32 %v1149_v27, %v1148_v26 }
 0x4a4   :  { %v1151_v3 = vrot.slane %v1150_v28, 1 }
 0x4a6   :  { %v1152_v60 = vadd.f32 %v1151_v3, %v1150_v28 }
 0x4a8   :  { %1185 = vmatmul.f32.vlgmr.msrb.gmra.mxu2 %v1152_v60 }
 0x52b   :  { %v1186_v58 = vpop.f32.mrf.mxu2 }
 0x52c   :  { %v1189_v61 = vmul.f32 0.001953125, %v1186_v58 }
 0x52e   :  { %1486 = vmatmul.msk.f32.vlgmr.msrb.gmra.mxu3 %vm1191_vm6, %v1189_v61 }
 0x536   :  { %1488 = vmatmul.msk.f32.vlgmr.msra.gmra.mxu3 %vm1191_vm6, %v1295_v39 }
 0x5b1   :  { %v1212_v11 = vpop.f32.mrf.mxu3 }
 0x5b2   :  { %v1215_v63 = vperm.slane %v1212_v11, 0 }
 0x5b4   :  { %v1216_v29 = vsub.f32 %v1140_v57, %v1215_v63  ;;  %v1217_v30 = vsub.f32 %v1141_v21, %v1215_v63  ;;  %v1218_v8 = vsub.f32 %v1142_v1, %v1215_v63  ;;  %v1219_v31 = vsub.f32 %v1143_v23, %v1215_v63 }
 0x5b6   :  { %v1220_v9 = vmul.f32 %v1216_v29, %v1216_v29  ;;  %v1221_v34 = vmul.f32 %v1217_v30, %v1217_v30  ;;  %v1222_v4 = vmul.f32 %v1218_v8, %v1218_v8  ;;  %v1223_v36 = vmul.f32 %v1219_v31, %v1219_v31 }
 0x5b8   :  { %v1224_v35 = vadd.f32 %v1221_v34, %v1220_v9 }
 0x5b9   :  { %v1316_v7 = vpop.f32.mrf.mxu3 }
 0x5ba   :  { %v1225_v19 = vadd.f32 %v1224_v35, %v1222_v4  ;;  %v1319_v48 = vperm.slane %v1316_v7, 0 }
 0x5bc   :  { %v1226_v5 = vadd.f32 %v1225_v19, %v1223_v36 }
 0x5be   :  { %v1227_v37 = vrot.slane %v1226_v5, 4 }
 0x5c0   :  { %v1228_v22 = vadd.f32 %v1227_v37, %v1226_v5 }
 0x5c2   :  { %v1229_v59 = vrot.slane %v1228_v22, 2 }
 0x5c4   :  { %v1230_v62 = vadd.f32 %v1229_v59, %v1228_v22 }
 0x5c6   :  { %v1231_v38 = vrot.slane %v1230_v62, 1 }
 0x5c8   :  { %v1232_v16 = vadd.f32 %v1231_v38, %v1230_v62 }
 0x5ca   :  { %1249 = vmatmul.f32.vlgmr.msra.gmra.mxu0 %v1232_v16 }
 0x647   :  { %v1250_v40 = vpop.f32.mrf.mxu0 }
 0x648   :  { %v1253_v41 = vmul.f32 0.001953125, %v1250_v40 }
 0x64a   :  { %v1255_v17 = vadd.f32 1e-05, %v1253_v41 }
 0x64c   :  { %1499 = vrsqrt.f32 %v1255_v17  ;;  %vm1262_vm8 = vweird.f32 %v1255_v17 }
 0x652   :  { %v1500_v42 = vpop.eup %1499 }
 0x653   :  { %v1257_v43 = vmul.f32 %v1500_v42, %v1255_v17  ;;  %vm1263_vm7 = vweird.f32 %v1500_v42 }
 0x654   :  { %vm1264_vm9 = vmor %vm1262_vm8, %vm1263_vm7 }
 0x655   :  { %v1258_v44 = vmul.f32 %v1500_v42, %v1257_v43 }
 0x657   :  { %v1259_v6 = vmul.f32 0.5, %v1258_v44 }
 0x659   :  { %v1260_v45 = vsub.f32 1.5, %v1259_v6 }
 0x65b   :  { %v1261_v10 = vmul.f32 %v1500_v42, %v1260_v45 }
 0x65d   :  { %v1265_v0 = vsel %vm1264_vm9, %v1500_v42, %v1261_v10 }
 0x65e   :  { %v1266_v32 = vmul.f32 %v1265_v0, %v1254_v46 }
 0x660   :  { %1487 = vmatmul.msk.f32.vlgmr.msra.gmra.mxu2 %vm1191_vm6, %v1266_v32 }
 0x6e3   :  { %v1287_v47 = vpop.f32.mrf.mxu2 }
 0x6e4   :  { %v1290_v33 = vperm.slane %v1287_v47, 0 }
 0x6e6   :  { %v1291_v49 = vmul.f32 %v1290_v33, %v1216_v29  ;;  %v1292_v50 = vmul.f32 %v1290_v33, %v1217_v30  ;;  %v1293_v20 = vmul.f32 %v1290_v33, %v1218_v8  ;;  %v1294_v51 = vmul.f32 %v1290_v33, %v1219_v31 }
 0x6e8   :  { %v1320_v52 = vadd.f32 %v1319_v48, %v1291_v49  ;;  %v1321_v53 = vadd.f32 %v1319_v48, %v1292_v50  ;;  %v1322_v21 = vadd.f32 %v1319_v48, %v1293_v20  ;;  %v1323_v54 = vadd.f32 %v1319_v48, %v1294_v51 }
 0x6ea   :  { %v1324_v55 = vmax.f32 %v1320_v52, 0.0  ;;  %v1325_v56 = vmax.f32 %v1321_v53, 0.0  ;;  %v1326_v57 = vmax.f32 %v1322_v21, 0.0  ;;  %v1327_v1 = vmax.f32 %v1323_v54, 0.0 }
 0x6ec   :  { %1328 = vst [vmem:[%s2481_s13] sm:$0xff] %v1324_v55 }
 0x6ed   :  { %1329 = vst [vmem:[%s2481_s13 + $0x8] sm:$0xff] %v1325_v56 }
 0x6ee   :  { %1330 = vst [vmem:[%s2481_s13 + $0x10] sm:$0xff] %v1326_v57 }
 0x6ef   :  { %1331 = vst [vmem:[%s2481_s13 + $0x18] sm:$0xff] %v1327_v1 }

</bundles_post_ra>
